<compile_context>
chip_gen: v5e
topology: v5e:2x2
jax: 0.10.0
libtpu: 0.0.40
codegen_flags: <defaults>
</compile_context>

<pallas_src>
import functools

import jax
import jax.numpy as jnp
from jax.experimental import pallas as pl
from jax.experimental.pallas import tpu as pltpu  # noqa: F401  (TPU backend)

_LANES = 128
_NEG_INF = -1e30


# ---------------------------------------------------------------------------
# Fused forward kernel
# ---------------------------------------------------------------------------

def _fused_forward_kernel(x_ref, bias_ref, gwa_ref, slab_ref, o_ref, *,
                          B, N, F, H, L, lin_dims, offs, neg_slope):
    BN = B * N

    # ---- node embedding: (B*N, F) @ (F, H) + b ------------------------------
    emb_w = slab_ref[offs["emb_w"]:offs["emb_w"] + F, 0:H]
    emb_b = slab_ref[offs["emb_b"]:offs["emb_b"] + 1, 0:H]
    h = jnp.dot(x_ref[...], emb_w, preferred_element_type=jnp.float32) + emb_b

    # block-diagonal additive attention mask (0 on edges, -1e30 elsewhere),
    # loaded once and shared by all L layers
    bias = bias_ref[...]                                       # (BN, BN)

    # ---- GAT stack (statically unrolled over layers) -------------------------
    for l in range(L):
        # one augmented matmul -> z (cols 0:H) and [el | er] (cols H:H+2)
        zea = jnp.dot(h, gwa_ref[l], preferred_element_type=jnp.float32)
        z = zea[:, 0:H]                                        # (BN, H)
        el = zea[:, H:H + 1]                                   # source term
        er = zea[:, H + 1:H + 2]                               # destination term
        # e[i, j] = LeakyReLU(er_i + el_j) for edge j -> i, masked to edges
        e = er + jnp.transpose(el)                             # (BN, BN)
        e = jnp.where(e > 0, e, neg_slope * e) + bias
        # edge-softmax over incoming edges (numerically stable, exact divide)
        e = e - jnp.max(e, axis=-1, keepdims=True)
        p = jnp.exp(e)                                         # masked -> exactly 0
        alpha = p / jnp.sum(p, axis=-1, keepdims=True)
        agg = jnp.dot(alpha, z, preferred_element_type=jnp.float32)
        gb = slab_ref[offs["gb"] + l:offs["gb"] + l + 1, 0:H]
        h = jnp.maximum(agg + gb, 0.0)                         # bias, then ReLU

    # ---- SumPooling as one matmul: (B, BN) @ (BN, H) -------------------------
    pool = slab_ref[offs["pool"]:offs["pool"] + B, 0:BN]
    y = jnp.dot(pool, h, preferred_element_type=jnp.float32)   # (B, H)

    # ---- MLP head -------------------------------------------------------------
    off = offs["lin"]
    n_lin = len(lin_dims) - 1
    for i in range(n_lin):
        din, dout = lin_dims[i], lin_dims[i + 1]
        w = slab_ref[off:off + din, 0:dout]
        b = slab_ref[off + din:off + din + 1, 0:dout]
        off += din + 1
        y = jnp.dot(y, w, preferred_element_type=jnp.float32) + b
        if i < n_lin - 1:
            y = jnp.maximum(y, 0.0)
    o_ref[...] = y.astype(o_ref.dtype)


# ---------------------------------------------------------------------------
# Parameter init (deterministic, synthetic)
# ---------------------------------------------------------------------------

def init_params(key, node_dim, hidden_dim, gcn_layers, linear_layers, target_dim):
    def glorot(k, shape):
        s = jnp.sqrt(2.0 / (shape[0] + shape[1]))
        return jax.random.normal(k, shape, jnp.float32) * s

    keys = jax.random.split(key, 1 + gcn_layers + linear_layers + 1)
    p = {
        "emb_w": glorot(keys[0], (node_dim, hidden_dim)),
        "emb_b": jnp.zeros((hidden_dim,), jnp.float32),
        "gat": [],
        "lin": [],
    }
    for l in range(gcn_layers):
        kw, ka, kb = jax.random.split(keys[1 + l], 3)
        p["gat"].append({
            "w": glorot(kw, (hidden_dim, hidden_dim)),
            "b": jnp.zeros((hidden_dim,), jnp.float32),
            "al": glorot(ka, (1, hidden_dim)).reshape(hidden_dim),
            "ar": glorot(kb, (1, hidden_dim)).reshape(hidden_dim),
        })
    dims = ([hidden_dim]
            + [hidden_dim // (2 ** (i + 1)) for i in range(linear_layers)]
            + [target_dim])
    for i in range(len(dims) - 1):
        p["lin"].append({
            "w": glorot(keys[1 + gcn_layers + i], (dims[i], dims[i + 1])),
            "b": jnp.zeros((dims[i + 1],), jnp.float32),
        })
    return p


# ---------------------------------------------------------------------------
# Forward (mirrors network.forward) — ONE pallas_call for the whole pass
# ---------------------------------------------------------------------------

def network_forward(params, **kwargs):
    adj = kwargs["Smiles_graphs"]
    node_feats = kwargs["Smiles_node_feature"]
    _ = kwargs["Smiles_edge_feature"]          # GATConv does not use edge feats
    _ = kwargs["elu1_smiles_graphs"]           # unused in reference forward
    _ = kwargs["elu2_smiles_graphs"]           # unused in reference forward
    # TODO(synk): dropout omitted (eval-mode no-op).

    B, N, F = node_feats.shape
    H = params["emb_w"].shape[1]
    L = len(params["gat"])
    lin_dims = ([params["lin"][0]["w"].shape[0]]
                + [lp["w"].shape[1] for lp in params["lin"]])
    target_dim = lin_dims[-1]
    BN = B * N

    x2d = node_feats.reshape(BN, F).astype(jnp.float32)

    # Block-diagonal additive attention mask (BN, BN): 0 on within-graph edges,
    # -1e30 on non-edges and all cross-graph pairs. Built once, reused by all L layers.
    adj_bd = jnp.zeros((BN, BN), jnp.float32)
    for b in range(B):
        adj_bd = adj_bd.at[b * N:(b + 1) * N, b * N:(b + 1) * N].set(adj[b])
    attn_bias = jnp.where(adj_bd > 0.0, 0.0, _NEG_INF).astype(jnp.float32)

    # Augmented per-layer GAT weights [w | w @ [al|ar] | 0-pad] -> (L, H, 128k)
    aug_w = -(-(H + 2) // _LANES) * _LANES
    gwa_list = []
    for lp in params["gat"]:
        attn = jnp.stack([lp["al"], lp["ar"]], axis=1)               # (H, 2)
        wa = jnp.concatenate([lp["w"], lp["w"] @ attn], axis=1)      # (H, H+2)
        gwa_list.append(jnp.pad(wa, ((0, 0), (0, aug_w - (H + 2)))))
    gwa = jnp.stack(gwa_list)                                        # (L, H, aug_w)

    # Pack every other small parameter into one lane-aligned (R, 128) slab.
    pool = jnp.repeat(jnp.eye(B, dtype=jnp.float32), N, axis=1)      # (B, BN)
    slab_rows, offs = [], {}

    def _add(name, block):
        offs[name] = sum(r.shape[0] for r in slab_rows)
        slab_rows.append(jnp.pad(block.astype(jnp.float32),
                                 ((0, 0), (0, _LANES - block.shape[1]))))

    _add("emb_w", params["emb_w"])                                   # (F, H)
    _add("emb_b", params["emb_b"].reshape(1, H))                     # (1, H)
    _add("gb", jnp.stack([lp["b"] for lp in params["gat"]]))         # (L, H)
    _add("pool", pool)                                               # (B, BN)
    offs["lin"] = sum(r.shape[0] for r in slab_rows)
    for lp in params["lin"]:
        slab_rows.append(jnp.pad(lp["w"],
                                 ((0, 0), (0, _LANES - lp["w"].shape[1]))))
        bb = lp["b"].reshape(1, -1)
        slab_rows.append(jnp.pad(bb, ((0, 0), (0, _LANES - bb.shape[1]))))
    slab = jnp.concatenate(slab_rows, axis=0)
    rows = slab.shape[0]
    pad_r = -(-rows // 8) * 8 - rows
    slab = jnp.pad(slab, ((0, pad_r), (0, 0)))

    kernel = functools.partial(
        _fused_forward_kernel,
        B=B, N=N, F=F, H=H, L=L, lin_dims=lin_dims, offs=offs, neg_slope=0.2)

    # TODO(synk): for larger B*N, cap the (B*N)^2 attention block to v7x's
    # 64 MiB VMEM and add a leading "parallel" batch grid axis (2 TCs on v7x).
    out = pl.pallas_call(
        kernel,
        out_shape=jax.ShapeDtypeStruct((B, target_dim), node_feats.dtype),
    )(x2d, attn_bias, gwa, slab)
    return out


# ---------------------------------------------------------------------------

if __name__ == "__main__":
    key = jax.random.PRNGKey(0)
    B, N, node_dim = 2, 16, 16
    hidden_dim, gcn_layers, linear_layers, target_dim = 64, 4, 2, 1

    k1, k2, kp = jax.random.split(key, 3)
    node_feats = jax.random.normal(k1, (B, N, node_dim), jnp.float32)
    a = (jax.random.uniform(k2, (B, N, N)) < 0.3).astype(jnp.float32)
    adj = jnp.maximum(a, jnp.transpose(a, (0, 2, 1)))            # symmetric
    adj = jnp.maximum(adj, jnp.eye(N, dtype=jnp.float32)[None])  # self-loops
    edge_feats = jnp.zeros((B, N, N, 4), jnp.float32)

    params = init_params(kp, node_dim, hidden_dim, gcn_layers,
                         linear_layers, target_dim)

    @jax.jit
    def run(node_feats, adj, edge_feats):
        return network_forward(
            params,
            Smiles_graphs=adj,
            Smiles_node_feature=node_feats,
            Smiles_edge_feature=edge_feats,
            elu1_smiles_graphs=adj,
            elu1_smiles_node_feature=node_feats,
            elu1_smiles_edge_feature=edge_feats,
            elu2_smiles_graphs=adj,
            elu2_smiles_node_feature=node_feats,
            elu2_smiles_edge_feature=edge_feats,
            ratio1_var=0.5,
            ratio2_var=0.5,
        )

    out = run(node_feats, adj, edge_feats)
    jax.block_until_ready(out)
    assert out.shape == (B, target_dim)
    print("KERNEL_OK")
</pallas_src>

<mosaic_0001>
module attributes {stable_mosaic.version = 11 : i64} {
  func.func @_fused_forward_kernel(%arg0: memref<32x16xf32, #tpu.memory_space<vmem>>, %arg1: memref<32x32xf32, #tpu.memory_space<vmem>>, %arg2: memref<4x64x128xf32, #tpu.memory_space<vmem>>, %arg3: memref<144x128xf32, #tpu.memory_space<vmem>>, %arg4: memref<2x1xf32, #tpu.memory_space<vmem>>) attributes {dimension_semantics = [], scalar_prefetch = 0 : i64, scratch_operands = 0 : i64, tpu.core_type = #tpu.core_type<tc>} {
    %c0 = arith.constant 0 : index
    %c0_0 = arith.constant 0 : index
    %0 = vector.load %arg3[%c0, %c0_0] : memref<144x128xf32, #tpu.memory_space<vmem>>, vector<16x64xf32>
    %c16 = arith.constant 16 : index
    %c0_1 = arith.constant 0 : index
    %1 = vector.load %arg3[%c16, %c0_1] : memref<144x128xf32, #tpu.memory_space<vmem>>, vector<1x64xf32>
    %c0_2 = arith.constant 0 : index
    %c0_3 = arith.constant 0 : index
    %2 = vector.load %arg0[%c0_2, %c0_3] : memref<32x16xf32, #tpu.memory_space<vmem>>, vector<32x16xf32>
    %cst = arith.constant dense<0.000000e+00> : vector<32x64xf32>
    %3 = tpu.matmul %2, %0, %cst {dimension_numbers = #tpu.dot_dimension_numbers<[1], [0], [0], [1], [0, 0, 1, 1], [], []>} : vector<32x16xf32>, vector<16x64xf32>, vector<32x64xf32> -> vector<32x64xf32>
    %4 = vector.broadcast %1 : vector<1x64xf32> to vector<32x64xf32>
    %5 = arith.addf %3, %4 : vector<32x64xf32>
    %c0_4 = arith.constant 0 : index
    %c0_5 = arith.constant 0 : index
    %6 = vector.load %arg1[%c0_4, %c0_5] : memref<32x32xf32, #tpu.memory_space<vmem>>, vector<32x32xf32>
    %c0_6 = arith.constant 0 : index
    %c0_7 = arith.constant 0 : index
    %c0_8 = arith.constant 0 : index
    %7 = vector.load %arg2[%c0_6, %c0_7, %c0_8] : memref<4x64x128xf32, #tpu.memory_space<vmem>>, vector<1x64x128xf32>
    %8 = vector.shape_cast %7 : vector<1x64x128xf32> to vector<64x128xf32>
    %cst_9 = arith.constant dense<0.000000e+00> : vector<32x128xf32>
    %9 = tpu.matmul %5, %8, %cst_9 {dimension_numbers = #tpu.dot_dimension_numbers<[1], [0], [0], [1], [0, 0, 1, 1], [], []>} : vector<32x64xf32>, vector<64x128xf32>, vector<32x128xf32> -> vector<32x128xf32>
    %10 = vector.extract_strided_slice %9 {offsets = [0, 0], sizes = [32, 64], strides = [1, 1]} : vector<32x128xf32> to vector<32x64xf32>
    %11 = vector.extract_strided_slice %9 {offsets = [0, 64], sizes = [32, 1], strides = [1, 1]} : vector<32x128xf32> to vector<32x1xf32>
    %12 = vector.extract_strided_slice %9 {offsets = [0, 65], sizes = [32, 1], strides = [1, 1]} : vector<32x128xf32> to vector<32x1xf32>
    %13 = tpu.transpose %11, [1, 0] : vector<32x1xf32> -> vector<1x32xf32>
    %14 = vector.broadcast %12 : vector<32x1xf32> to vector<32x32xf32>
    %15 = vector.broadcast %13 : vector<1x32xf32> to vector<32x32xf32>
    %16 = arith.addf %14, %15 : vector<32x32xf32>
    %cst_10 = arith.constant 0.000000e+00 : f32
    %17 = vector.broadcast %cst_10 : f32 to vector<32x32xf32>
    %18 = arith.cmpf ogt, %16, %17 : vector<32x32xf32>
    %cst_11 = arith.constant 2.000000e-01 : f32
    %19 = vector.broadcast %cst_11 : f32 to vector<32x32xf32>
    %20 = arith.mulf %19, %16 : vector<32x32xf32>
    %21 = arith.select %18, %16, %20 : vector<32x32xi1>, vector<32x32xf32>
    %22 = arith.addf %21, %6 : vector<32x32xf32>
    %cst_12 = arith.constant dense<0xFF800000> : vector<32xf32>
    %23 = vector.multi_reduction <maximumf>, %22, %cst_12 [1] : vector<32x32xf32> to vector<32xf32>
    %24 = vector.shape_cast %23 : vector<32xf32> to vector<32x1xf32>
    %25 = vector.broadcast %24 : vector<32x1xf32> to vector<32x32xf32>
    %26 = arith.subf %22, %25 : vector<32x32xf32>
    %27 = math.exp %26 : vector<32x32xf32>
    %cst_13 = arith.constant dense<0.000000e+00> : vector<32xf32>
    %28 = vector.multi_reduction <add>, %27, %cst_13 [1] : vector<32x32xf32> to vector<32xf32>
    %29 = vector.shape_cast %28 : vector<32xf32> to vector<32x1xf32>
    %30 = vector.broadcast %29 : vector<32x1xf32> to vector<32x32xf32>
    %31 = arith.divf %27, %30 : vector<32x32xf32>
    %cst_14 = arith.constant dense<0.000000e+00> : vector<32x64xf32>
    %32 = tpu.matmul %31, %10, %cst_14 {dimension_numbers = #tpu.dot_dimension_numbers<[1], [0], [0], [1], [0, 0, 1, 1], [], []>} : vector<32x32xf32>, vector<32x64xf32>, vector<32x64xf32> -> vector<32x64xf32>
    %c17 = arith.constant 17 : index
    %c0_15 = arith.constant 0 : index
    %33 = vector.load %arg3[%c17, %c0_15] : memref<144x128xf32, #tpu.memory_space<vmem>>, vector<1x64xf32>
    %34 = vector.broadcast %33 : vector<1x64xf32> to vector<32x64xf32>
    %35 = arith.addf %32, %34 : vector<32x64xf32>
    %cst_16 = arith.constant 0.000000e+00 : f32
    %36 = vector.broadcast %cst_16 : f32 to vector<32x64xf32>
    %37 = arith.maximumf %35, %36 : vector<32x64xf32>
    %c1 = arith.constant 1 : index
    %c0_17 = arith.constant 0 : index
    %c0_18 = arith.constant 0 : index
    %38 = vector.load %arg2[%c1, %c0_17, %c0_18] : memref<4x64x128xf32, #tpu.memory_space<vmem>>, vector<1x64x128xf32>
    %39 = vector.shape_cast %38 : vector<1x64x128xf32> to vector<64x128xf32>
    %cst_19 = arith.constant dense<0.000000e+00> : vector<32x128xf32>
    %40 = tpu.matmul %37, %39, %cst_19 {dimension_numbers = #tpu.dot_dimension_numbers<[1], [0], [0], [1], [0, 0, 1, 1], [], []>} : vector<32x64xf32>, vector<64x128xf32>, vector<32x128xf32> -> vector<32x128xf32>
    %41 = vector.extract_strided_slice %40 {offsets = [0, 0], sizes = [32, 64], strides = [1, 1]} : vector<32x128xf32> to vector<32x64xf32>
    %42 = vector.extract_strided_slice %40 {offsets = [0, 64], sizes = [32, 1], strides = [1, 1]} : vector<32x128xf32> to vector<32x1xf32>
    %43 = vector.extract_strided_slice %40 {offsets = [0, 65], sizes = [32, 1], strides = [1, 1]} : vector<32x128xf32> to vector<32x1xf32>
    %44 = tpu.transpose %42, [1, 0] : vector<32x1xf32> -> vector<1x32xf32>
    %45 = vector.broadcast %43 : vector<32x1xf32> to vector<32x32xf32>
    %46 = vector.broadcast %44 : vector<1x32xf32> to vector<32x32xf32>
    %47 = arith.addf %45, %46 : vector<32x32xf32>
    %cst_20 = arith.constant 0.000000e+00 : f32
    %48 = vector.broadcast %cst_20 : f32 to vector<32x32xf32>
    %49 = arith.cmpf ogt, %47, %48 : vector<32x32xf32>
    %cst_21 = arith.constant 2.000000e-01 : f32
    %50 = vector.broadcast %cst_21 : f32 to vector<32x32xf32>
    %51 = arith.mulf %50, %47 : vector<32x32xf32>
    %52 = arith.select %49, %47, %51 : vector<32x32xi1>, vector<32x32xf32>
    %53 = arith.addf %52, %6 : vector<32x32xf32>
    %cst_22 = arith.constant dense<0xFF800000> : vector<32xf32>
    %54 = vector.multi_reduction <maximumf>, %53, %cst_22 [1] : vector<32x32xf32> to vector<32xf32>
    %55 = vector.shape_cast %54 : vector<32xf32> to vector<32x1xf32>
    %56 = vector.broadcast %55 : vector<32x1xf32> to vector<32x32xf32>
    %57 = arith.subf %53, %56 : vector<32x32xf32>
    %58 = math.exp %57 : vector<32x32xf32>
    %cst_23 = arith.constant dense<0.000000e+00> : vector<32xf32>
    %59 = vector.multi_reduction <add>, %58, %cst_23 [1] : vector<32x32xf32> to vector<32xf32>
    %60 = vector.shape_cast %59 : vector<32xf32> to vector<32x1xf32>
    %61 = vector.broadcast %60 : vector<32x1xf32> to vector<32x32xf32>
    %62 = arith.divf %58, %61 : vector<32x32xf32>
    %cst_24 = arith.constant dense<0.000000e+00> : vector<32x64xf32>
    %63 = tpu.matmul %62, %41, %cst_24 {dimension_numbers = #tpu.dot_dimension_numbers<[1], [0], [0], [1], [0, 0, 1, 1], [], []>} : vector<32x32xf32>, vector<32x64xf32>, vector<32x64xf32> -> vector<32x64xf32>
    %c18 = arith.constant 18 : index
    %c0_25 = arith.constant 0 : index
    %64 = vector.load %arg3[%c18, %c0_25] : memref<144x128xf32, #tpu.memory_space<vmem>>, vector<1x64xf32>
    %65 = vector.broadcast %64 : vector<1x64xf32> to vector<32x64xf32>
    %66 = arith.addf %63, %65 : vector<32x64xf32>
    %cst_26 = arith.constant 0.000000e+00 : f32
    %67 = vector.broadcast %cst_26 : f32 to vector<32x64xf32>
    %68 = arith.maximumf %66, %67 : vector<32x64xf32>
    %c2 = arith.constant 2 : index
    %c0_27 = arith.constant 0 : index
    %c0_28 = arith.constant 0 : index
    %69 = vector.load %arg2[%c2, %c0_27, %c0_28] : memref<4x64x128xf32, #tpu.memory_space<vmem>>, vector<1x64x128xf32>
    %70 = vector.shape_cast %69 : vector<1x64x128xf32> to vector<64x128xf32>
    %cst_29 = arith.constant dense<0.000000e+00> : vector<32x128xf32>
    %71 = tpu.matmul %68, %70, %cst_29 {dimension_numbers = #tpu.dot_dimension_numbers<[1], [0], [0], [1], [0, 0, 1, 1], [], []>} : vector<32x64xf32>, vector<64x128xf32>, vector<32x128xf32> -> vector<32x128xf32>
    %72 = vector.extract_strided_slice %71 {offsets = [0, 0], sizes = [32, 64], strides = [1, 1]} : vector<32x128xf32> to vector<32x64xf32>
    %73 = vector.extract_strided_slice %71 {offsets = [0, 64], sizes = [32, 1], strides = [1, 1]} : vector<32x128xf32> to vector<32x1xf32>
    %74 = vector.extract_strided_slice %71 {offsets = [0, 65], sizes = [32, 1], strides = [1, 1]} : vector<32x128xf32> to vector<32x1xf32>
    %75 = tpu.transpose %73, [1, 0] : vector<32x1xf32> -> vector<1x32xf32>
    %76 = vector.broadcast %74 : vector<32x1xf32> to vector<32x32xf32>
    %77 = vector.broadcast %75 : vector<1x32xf32> to vector<32x32xf32>
    %78 = arith.addf %76, %77 : vector<32x32xf32>
    %cst_30 = arith.constant 0.000000e+00 : f32
    %79 = vector.broadcast %cst_30 : f32 to vector<32x32xf32>
    %80 = arith.cmpf ogt, %78, %79 : vector<32x32xf32>
    %cst_31 = arith.constant 2.000000e-01 : f32
    %81 = vector.broadcast %cst_31 : f32 to vector<32x32xf32>
    %82 = arith.mulf %81, %78 : vector<32x32xf32>
    %83 = arith.select %80, %78, %82 : vector<32x32xi1>, vector<32x32xf32>
    %84 = arith.addf %83, %6 : vector<32x32xf32>
    %cst_32 = arith.constant dense<0xFF800000> : vector<32xf32>
    %85 = vector.multi_reduction <maximumf>, %84, %cst_32 [1] : vector<32x32xf32> to vector<32xf32>
    %86 = vector.shape_cast %85 : vector<32xf32> to vector<32x1xf32>
    %87 = vector.broadcast %86 : vector<32x1xf32> to vector<32x32xf32>
    %88 = arith.subf %84, %87 : vector<32x32xf32>
    %89 = math.exp %88 : vector<32x32xf32>
    %cst_33 = arith.constant dense<0.000000e+00> : vector<32xf32>
    %90 = vector.multi_reduction <add>, %89, %cst_33 [1] : vector<32x32xf32> to vector<32xf32>
    %91 = vector.shape_cast %90 : vector<32xf32> to vector<32x1xf32>
    %92 = vector.broadcast %91 : vector<32x1xf32> to vector<32x32xf32>
    %93 = arith.divf %89, %92 : vector<32x32xf32>
    %cst_34 = arith.constant dense<0.000000e+00> : vector<32x64xf32>
    %94 = tpu.matmul %93, %72, %cst_34 {dimension_numbers = #tpu.dot_dimension_numbers<[1], [0], [0], [1], [0, 0, 1, 1], [], []>} : vector<32x32xf32>, vector<32x64xf32>, vector<32x64xf32> -> vector<32x64xf32>
    %c19 = arith.constant 19 : index
    %c0_35 = arith.constant 0 : index
    %95 = vector.load %arg3[%c19, %c0_35] : memref<144x128xf32, #tpu.memory_space<vmem>>, vector<1x64xf32>
    %96 = vector.broadcast %95 : vector<1x64xf32> to vector<32x64xf32>
    %97 = arith.addf %94, %96 : vector<32x64xf32>
    %cst_36 = arith.constant 0.000000e+00 : f32
    %98 = vector.broadcast %cst_36 : f32 to vector<32x64xf32>
    %99 = arith.maximumf %97, %98 : vector<32x64xf32>
    %c3 = arith.constant 3 : index
    %c0_37 = arith.constant 0 : index
    %c0_38 = arith.constant 0 : index
    %100 = vector.load %arg2[%c3, %c0_37, %c0_38] : memref<4x64x128xf32, #tpu.memory_space<vmem>>, vector<1x64x128xf32>
    %101 = vector.shape_cast %100 : vector<1x64x128xf32> to vector<64x128xf32>
    %cst_39 = arith.constant dense<0.000000e+00> : vector<32x128xf32>
    %102 = tpu.matmul %99, %101, %cst_39 {dimension_numbers = #tpu.dot_dimension_numbers<[1], [0], [0], [1], [0, 0, 1, 1], [], []>} : vector<32x64xf32>, vector<64x128xf32>, vector<32x128xf32> -> vector<32x128xf32>
    %103 = vector.extract_strided_slice %102 {offsets = [0, 0], sizes = [32, 64], strides = [1, 1]} : vector<32x128xf32> to vector<32x64xf32>
    %104 = vector.extract_strided_slice %102 {offsets = [0, 64], sizes = [32, 1], strides = [1, 1]} : vector<32x128xf32> to vector<32x1xf32>
    %105 = vector.extract_strided_slice %102 {offsets = [0, 65], sizes = [32, 1], strides = [1, 1]} : vector<32x128xf32> to vector<32x1xf32>
    %106 = tpu.transpose %104, [1, 0] : vector<32x1xf32> -> vector<1x32xf32>
    %107 = vector.broadcast %105 : vector<32x1xf32> to vector<32x32xf32>
    %108 = vector.broadcast %106 : vector<1x32xf32> to vector<32x32xf32>
    %109 = arith.addf %107, %108 : vector<32x32xf32>
    %cst_40 = arith.constant 0.000000e+00 : f32
    %110 = vector.broadcast %cst_40 : f32 to vector<32x32xf32>
    %111 = arith.cmpf ogt, %109, %110 : vector<32x32xf32>
    %cst_41 = arith.constant 2.000000e-01 : f32
    %112 = vector.broadcast %cst_41 : f32 to vector<32x32xf32>
    %113 = arith.mulf %112, %109 : vector<32x32xf32>
    %114 = arith.select %111, %109, %113 : vector<32x32xi1>, vector<32x32xf32>
    %115 = arith.addf %114, %6 : vector<32x32xf32>
    %cst_42 = arith.constant dense<0xFF800000> : vector<32xf32>
    %116 = vector.multi_reduction <maximumf>, %115, %cst_42 [1] : vector<32x32xf32> to vector<32xf32>
    %117 = vector.shape_cast %116 : vector<32xf32> to vector<32x1xf32>
    %118 = vector.broadcast %117 : vector<32x1xf32> to vector<32x32xf32>
    %119 = arith.subf %115, %118 : vector<32x32xf32>
    %120 = math.exp %119 : vector<32x32xf32>
    %cst_43 = arith.constant dense<0.000000e+00> : vector<32xf32>
    %121 = vector.multi_reduction <add>, %120, %cst_43 [1] : vector<32x32xf32> to vector<32xf32>
    %122 = vector.shape_cast %121 : vector<32xf32> to vector<32x1xf32>
    %123 = vector.broadcast %122 : vector<32x1xf32> to vector<32x32xf32>
    %124 = arith.divf %120, %123 : vector<32x32xf32>
    %cst_44 = arith.constant dense<0.000000e+00> : vector<32x64xf32>
    %125 = tpu.matmul %124, %103, %cst_44 {dimension_numbers = #tpu.dot_dimension_numbers<[1], [0], [0], [1], [0, 0, 1, 1], [], []>} : vector<32x32xf32>, vector<32x64xf32>, vector<32x64xf32> -> vector<32x64xf32>
    %c20 = arith.constant 20 : index
    %c0_45 = arith.constant 0 : index
    %126 = vector.load %arg3[%c20, %c0_45] : memref<144x128xf32, #tpu.memory_space<vmem>>, vector<1x64xf32>
    %127 = vector.broadcast %126 : vector<1x64xf32> to vector<32x64xf32>
    %128 = arith.addf %125, %127 : vector<32x64xf32>
    %cst_46 = arith.constant 0.000000e+00 : f32
    %129 = vector.broadcast %cst_46 : f32 to vector<32x64xf32>
    %130 = arith.maximumf %128, %129 : vector<32x64xf32>
    %c21 = arith.constant 21 : index
    %c0_47 = arith.constant 0 : index
    %131 = vector.load %arg3[%c21, %c0_47] : memref<144x128xf32, #tpu.memory_space<vmem>>, vector<2x32xf32>
    %cst_48 = arith.constant dense<0.000000e+00> : vector<2x64xf32>
    %132 = tpu.matmul %131, %130, %cst_48 {dimension_numbers = #tpu.dot_dimension_numbers<[1], [0], [0], [1], [0, 0, 1, 1], [], []>} : vector<2x32xf32>, vector<32x64xf32>, vector<2x64xf32> -> vector<2x64xf32>
    %c23 = arith.constant 23 : index
    %c0_49 = arith.constant 0 : index
    %133 = vector.load %arg3[%c23, %c0_49] : memref<144x128xf32, #tpu.memory_space<vmem>>, vector<64x32xf32>
    %c87 = arith.constant 87 : index
    %c0_50 = arith.constant 0 : index
    %134 = vector.load %arg3[%c87, %c0_50] : memref<144x128xf32, #tpu.memory_space<vmem>>, vector<1x32xf32>
    %cst_51 = arith.constant dense<0.000000e+00> : vector<2x32xf32>
    %135 = tpu.matmul %132, %133, %cst_51 {dimension_numbers = #tpu.dot_dimension_numbers<[1], [0], [0], [1], [0, 0, 1, 1], [], []>} : vector<2x64xf32>, vector<64x32xf32>, vector<2x32xf32> -> vector<2x32xf32>
    %136 = vector.broadcast %134 : vector<1x32xf32> to vector<2x32xf32>
    %137 = arith.addf %135, %136 : vector<2x32xf32>
    %cst_52 = arith.constant 0.000000e+00 : f32
    %138 = vector.broadcast %cst_52 : f32 to vector<2x32xf32>
    %139 = arith.maximumf %137, %138 : vector<2x32xf32>
    %c88 = arith.constant 88 : index
    %c0_53 = arith.constant 0 : index
    %140 = vector.load %arg3[%c88, %c0_53] : memref<144x128xf32, #tpu.memory_space<vmem>>, vector<32x16xf32>
    %c120 = arith.constant 120 : index
    %c0_54 = arith.constant 0 : index
    %141 = vector.load %arg3[%c120, %c0_54] : memref<144x128xf32, #tpu.memory_space<vmem>>, vector<1x16xf32>
    %cst_55 = arith.constant dense<0.000000e+00> : vector<2x16xf32>
    %142 = tpu.matmul %139, %140, %cst_55 {dimension_numbers = #tpu.dot_dimension_numbers<[1], [0], [0], [1], [0, 0, 1, 1], [], []>} : vector<2x32xf32>, vector<32x16xf32>, vector<2x16xf32> -> vector<2x16xf32>
    %143 = vector.broadcast %141 : vector<1x16xf32> to vector<2x16xf32>
    %144 = arith.addf %142, %143 : vector<2x16xf32>
    %cst_56 = arith.constant 0.000000e+00 : f32
    %145 = vector.broadcast %cst_56 : f32 to vector<2x16xf32>
    %146 = arith.maximumf %144, %145 : vector<2x16xf32>
    %c121 = arith.constant 121 : index
    %c0_57 = arith.constant 0 : index
    %147 = vector.load %arg3[%c121, %c0_57] : memref<144x128xf32, #tpu.memory_space<vmem>>, vector<16x1xf32>
    %c137 = arith.constant 137 : index
    %c0_58 = arith.constant 0 : index
    %148 = vector.load %arg3[%c137, %c0_58] : memref<144x128xf32, #tpu.memory_space<vmem>>, vector<1x1xf32>
    %cst_59 = arith.constant dense<0.000000e+00> : vector<2x1xf32>
    %149 = tpu.matmul %146, %147, %cst_59 {dimension_numbers = #tpu.dot_dimension_numbers<[1], [0], [0], [1], [0, 0, 1, 1], [], []>} : vector<2x16xf32>, vector<16x1xf32>, vector<2x1xf32> -> vector<2x1xf32>
    %150 = vector.broadcast %148 : vector<1x1xf32> to vector<2x1xf32>
    %151 = arith.addf %149, %150 : vector<2x1xf32>
    %c0_60 = arith.constant 0 : index
    %c0_61 = arith.constant 0 : index
    %152 = vector.load %arg4[%c0_60, %c0_61] : memref<2x1xf32, #tpu.memory_space<vmem>>, vector<2x1xf32>
    tpu.vector_store %arg4[%c0_60, %c0_61], %151 {strides = array<i32>} : memref<2x1xf32, #tpu.memory_space<vmem>>, vector<2x1xf32>,
    return
  }
}

</mosaic_0001>

<bundles_post_ra>
// kernel: run.1
= control target key start
LH: loop header
LB: loop body
LE: loop exit
PB: predicated region body
PF: predicated region fallthrough
CT: control target
= control target key end

     0   :  { %vm25_vm0 = vcmask 130048   ;;  %v1455_v14 = vmov 65   ;;  %vm79_vm1 = vcmask 523264   ;;  %vm206_vm4 = vcmask 261120   ;;  %s1851_s3 = inlined_call_operand.vmem [shape: f32[144,128], index: 3, kind: input, shape index: {}]   ;;  %s1852_s0 = inlined_call_operand.vmem [shape: f32[32,16], index: 0, kind: input, shape index: {}]   ;;  %s1853_s2 = inlined_call_operand.vmem [shape: f32[4,64,128], index: 2, kind: input, shape index: {}]   ;;  %s1854_s1 = inlined_call_operand.vmem [shape: f32[32,32], index: 1, kind: input, shape index: {}]   ;;  %s1855_s4 = inlined_call_operand.vmem [shape: f32[2,1], index: 4, kind: output, shape index: {}]  }
   0x1   :  { %v18_v0 = vld [vmem:[%s1851_s3 + $0x8] sm:$0xff]  ;;  %v17_v1 = vld [vmem:[%s1851_s3] sm:$0xff]  ;;  %v78_v3 = vld [vmem:[%s1853_s2 + $0x38] sm:$0xff]  ;;  %1376 = vset.pattern.permute.xlu2 %v1455_v14  ;;  %1377 = vset.pattern.permute.xlu0 %v1455_v14 }
   0x2   :  { %52 = vmatpush.msra.mxu0 %v18_v0  ;;  %v20_v2 = vld [vmem:[%s1852_s0] sm:$0xff]  ;;  %v77_v4 = vld [vmem:[%s1853_s2 + $0x30] sm:$0xff]  ;;  %100 = vmatpush.msra.mxu1 %v78_v3  ;;  %v76_v5 = vld [vmem:[%s1853_s2 + $0x28] sm:$0xff] }
   0x3   :  { %v75_v6 = vld [vmem:[%s1853_s2 + $0x20] sm:$0xff]  ;;  %v74_v7 = vld [vmem:[%s1853_s2 + $0x18] sm:$0xff]  ;;  %v21_v8 = vld [vmem:[%s1852_s0 + $0x8] sm:$0xff] }
   0x4   :  { %53 = vmatpush.msra.mxu0 %v17_v1  ;;  %101 = vmatpush.msra.mxu1 %v77_v4  ;;  %v73_v9 = vld [vmem:[%s1853_s2 + $0x10] sm:$0xff]  ;;  %v23_v11 = vld [vmem:[%s1852_s0 + $0x18] sm:$0xff]  ;;  %v72_v12 = vld [vmem:[%s1853_s2 + $0x8] sm:$0xff] }
   0x5   :  { %1305 = vmatmul.msk.f32.vlgmr.msra.gmra.mxu0 %vm25_vm0, %v20_v2  ;;  %v22_v10 = vld [vmem:[%s1852_s0 + $0x10] sm:$0xff]  ;;  %v71_v13 = vld [vmem:[%s1853_s2] sm:$0xff]  ;;  %s1456_s0 = smov 64   ;;  %v1542_v40 = vld [vmem:[%s1854_s1 + $0x8] sm:$0xff] }
   0x6   :  { %102 = vmatpush.msra.mxu1 %v76_v5  ;;  %v1379_v15 = vld [vmem:[%s1851_s3 + $0x10] ss:$0 sm:$0xff]  ;;  %v1547_v41 = vld [vmem:[%s1854_s1] sm:$0xff]  ;;  %v1563_v58 = vld [vmem:[%s1854_s1 + $0x18] sm:$0xff] }
   0x7   :  { %v1556_v52 = vld [vmem:[%s1854_s1 + $0x10] sm:$0xff] }
   0x8   :  { %103 = vmatpush.msra.mxu1 %v75_v6 }
   0xa   :  { %104 = vmatpush.msra.mxu1 %v74_v7 }
   0xc   :  { %105 = vmatpush.msra.mxu1 %v73_v9 }
   0xd   :  { %1306 = vmatmul.msk.f32.gmra.mxu0 %vm25_vm0, %v21_v8 }
   0xe   :  { %106 = vmatpush.msra.mxu1 %v72_v12 }
  0x10   :  { %107 = vmatpush.msra.mxu1 %v71_v13 }
  0x15   :  { %1307 = vmatmul.msk.f32.gmra.mxu0 %vm25_vm0, %v22_v10 }
  0x1d   :  { %1308 = vmatmul.msk.f32.gmra.mxu0 %vm25_vm0, %v23_v11 }
  0x82   :  { %v55_v16 = vpop.f32.mrf.mxu0 }
  0x83   :  { %v56_v17 = vadd.f32 %v1379_v15, %v55_v16 }
  0x85   :  { %1309 = vmatmul.msk.f32.vlgmr.msra.gmra.mxu1 %vm79_vm1, %v56_v17 }
  0x8a   :  { %v58_v18 = vpop.f32.mrf.mxu0 }
  0x8b   :  { %v59_v19 = vadd.f32 %v1379_v15, %v58_v18 }
  0x8d   :  { %1310 = vmatmul.msk.f32.gmra.mxu1 %vm79_vm1, %v59_v19 }
  0x92   :  { %v61_v20 = vpop.f32.mrf.mxu0 }
  0x93   :  { %v62_v21 = vadd.f32 %v1379_v15, %v61_v20 }
  0x95   :  { %1311 = vmatmul.msk.f32.gmra.mxu1 %vm79_vm1, %v62_v21 }
  0x9a   :  { %v64_v22 = vpop.f32.mrf.mxu0 }
  0x9b   :  { %v65_v23 = vadd.f32 %v1379_v15, %v64_v22 }
  0x9d   :  { %1312 = vmatmul.msk.f32.gmra.mxu1 %vm79_vm1, %v65_v23 }
 0x102   :  { %v109_v24 = vpop.f32.mrf.mxu1 }
 0x103   :  { %170 = vperm.xlu2 %1376, %v109_v24   ;;  %125 = vrot.lane.b32.xlu0 %v109_v24, %s1456_s0 }
 0x10a   :  { %v112_v25 = vpop.f32.mrf.mxu1 }
 0x10b   :  { %174 = vperm.xlu2 %1376, %v112_v25   ;;  %127 = vrot.lane.b32.xlu0 %v112_v25, %s1456_s0 }
 0x112   :  { %v115_v26 = vpop.f32.mrf.mxu1 }
 0x113   :  { %178 = vperm.xlu0 %1377, %v115_v26   ;;  %129 = vrot.lane.b32.xlu1 %v115_v26, %s1456_s0 }
 0x11a   :  { %v118_v27 = vpop.f32.mrf.mxu1 }
 0x11b   :  { %182 = vperm.xlu2 %1376, %v118_v27   ;;  %131 = vrot.lane.b32.xlu1 %v118_v27, %s1456_s0 }
 0x11c   :  { %329 = vmatpush.msra.mxu2 %v118_v27 }
 0x11e   :  { %330 = vmatpush.msra.mxu2 %v115_v26 }
 0x120   :  { %331 = vmatpush.msra.mxu2 %v112_v25 }
 0x122   :  { %332 = vmatpush.msra.mxu2 %v109_v24 }
 0x15d   :  { %v171_v32 = vpop.permute.xlu2 %170 }
 0x165   :  { %v175_v35 = vpop.permute.xlu2 %174 }
 0x175   :  { %v126_v28 = vpop.permute.xlu0 %125  ;;  %v183_v49 = vpop.permute.xlu2 %182 }
 0x176   :  { %137 = vxpose.xlu1.b32.start [1/4] (short) (narrow) %v126_v28, 8 }
 0x17d   :  { %v128_v29 = vpop.permute.xlu0 %127 }
 0x17e   :  { %138 = vxpose.xlu1.b32.cont [2/4] (short) (narrow) %v128_v29, 8 }
 0x185   :  { %v130_v30 = vpop.permute.xlu1 %129  ;;  %v179_v36 = vpop.permute.xlu0 %178 }
 0x186   :  { %139 = vxpose.xlu1.b32.cont [3/4] (short) (narrow) %v130_v30, 8 }
 0x18d   :  { %v132_v31 = vpop.permute.xlu1 %131 }
 0x18e   :  { %140 = vxpose.xlu1.b32.end [4/4] (short) (narrow) %v132_v31, 8  ;;  %v1324_v31 = vld [vmem:[%s1853_s2 + $0x78] sm:$0xff] }
 0x18f   :  { %379 = vmatpush.msra.mxu3 %v1324_v31 }
 0x1e1   :  { %1378 = vset.pattern.permute.xlu1 %v1455_v14 }
 0x21a   :  { %v153_v33 = vpop.trf.xlu1 }
 0x21b   :  { %v185_v34 = vperm.slane %v153_v33, 0 }
 0x21d   :  { %v187_v37 = vadd.f32 %v185_v34, %v175_v35  ;;  %v186_v38 = vadd.f32 %v185_v34, %v171_v32  ;;  %v188_v39 = vadd.f32 %v185_v34, %v179_v36  ;;  %v189_v54 = vadd.f32 %v185_v34, %v183_v49  ;;  %v1323_v32 = vld [vmem:[%s1853_s2 + $0x70] sm:$0xff]  ;;  %v1322_v36 = vld [vmem:[%s1853_s2 + $0x68] sm:$0xff]  ;;  %v1320_v49 = vld [vmem:[%s1853_s2 + $0x58] sm:$0xff] }
 0x21e   :  { %380 = vmatpush.msra.mxu3 %v1323_v32 }
 0x21f   :  { %vm191_vm2 = vcmp.gt.f32.partialorder %v187_v37, 0.0  ;;  %v195_v42 = vmul.f32 0.2, %v187_v37  ;;  %vm190_vm3 = vcmp.gt.f32.partialorder %v186_v38, 0.0  ;;  %v194_v43 = vmul.f32 0.2, %v186_v38 }
 0x220   :  { %v196_v46 = vmul.f32 0.2, %v188_v39  ;;  %vm192_vm5 = vcmp.gt.f32.partialorder %v188_v39, 0.0  ;;  %v197_v56 = vmul.f32 0.2, %v189_v54  ;;  %vm193_vm6 = vcmp.gt.f32.partialorder %v189_v54, 0.0  ;;  %381 = vmatpush.msra.mxu3 %v1322_v36 }
 0x221   :  { %v199_v44 = vsel %vm191_vm2, %v187_v37, %v195_v42  ;;  %v198_v45 = vsel %vm190_vm3, %v186_v38, %v194_v43  ;;  %v1321_v43 = vld [vmem:[%s1853_s2 + $0x60] sm:$0xff] }
 0x222   :  { %v203_v47 = vadd.f32 %v199_v44, %v1542_v40  ;;  %v202_v48 = vadd.f32 %v198_v45, %v1547_v41  ;;  %v200_v53 = vsel %vm192_vm5, %v188_v39, %v196_v46  ;;  %v201_v59 = vsel %vm193_vm6, %v189_v54, %v197_v56  ;;  %382 = vmatpush.msra.mxu3 %v1321_v43 }
 0x223   :  { %v204_v55 = vadd.f32 %v200_v53, %v1556_v52  ;;  %v205_v60 = vadd.f32 %v201_v59, %v1563_v58 }
 0x224   :  { %v210_v50 = vsel %vm206_vm4, %v203_v47, -inf  ;;  %v207_v51 = vsel %vm206_vm4, %v202_v48, -inf  ;;  %383 = vmatpush.msra.mxu3 %v1320_v49 }
 0x225   :  { %211 = vmax.xlane.f32.xlu0 %v210_v50  ;;  %208 = vmax.xlane.f32.xlu2 %v207_v51  ;;  %v213_v57 = vsel %vm206_vm4, %v204_v55, -inf  ;;  %v216_v61 = vsel %vm206_vm4, %v205_v60, -inf }
 0x22d   :  { %214 = vmax.xlane.f32.xlu2 %v213_v57 }
 0x235   :  { %217 = vmax.xlane.f32.xlu2 %v216_v61 }
 0x298   :  { %v212_v62 = vpop.xlane.xlu0 %211  ;;  %v209_v63 = vpop.xlane.xlu2 %208 }
 0x299   :  { %v220_v0 = vsub.f32 %v203_v47, %v212_v62  ;;  %v219_v1 = vsub.f32 %v202_v48, %v209_v63 }
 0x29b   :  { %v225_v2 = vmul.f32 1.442695, %v220_v0  ;;  %v223_v3 = vmul.f32 1.442695, %v219_v1 }
 0x29d   :  { %1387 = vpow2.f32 %v225_v2 }
 0x29e   :  { %1389 = vpow2.f32 %v223_v3 }
 0x2a0   :  { %v215_v4 = vpop.xlane.xlu2 %214 }
 0x2a1   :  { %v221_v5 = vsub.f32 %v204_v55, %v215_v4 }
 0x2a3   :  { %v1567_v6 = vpop.eup %1387  ;;  %v227_v7 = vmul.f32 1.442695, %v221_v5 }
 0x2a4   :  { %v1390_v8 = vpop.eup %1389  ;;  %v234_v9 = vsel %vm206_vm4, %v1567_v6, 0.0 }
 0x2a5   :  { %1391 = vpow2.f32 %v227_v7  ;;  %235 = vadd.xlane.f32.xlu2 %v234_v9  ;;  %v231_v10 = vsel %vm206_vm4, %v1390_v8, 0.0 }
 0x2a6   :  { %232 = vadd.xlane.f32.xlu0 %v231_v10 }
 0x2a8   :  { %v218_v11 = vpop.xlane.xlu2 %217 }
 0x2a9   :  { %v222_v12 = vsub.f32 %v205_v60, %v218_v11  ;;  %v1319_v11 = vld [vmem:[%s1853_s2 + $0x50] sm:$0xff] }
 0x2aa   :  { %384 = vmatpush.msra.mxu3 %v1319_v11 }
 0x2ab   :  { %v1572_v13 = vpop.eup %1391  ;;  %v229_v14 = vmul.f32 1.442695, %v222_v12  ;;  %v1318_v12 = vld [vmem:[%s1853_s2 + $0x48] sm:$0xff] }
 0x2ac   :  { %v237_v15 = vsel %vm206_vm4, %v1572_v13, 0.0  ;;  %385 = vmatpush.msra.mxu3 %v1318_v12 }
 0x2ad   :  { %1393 = vpow2.f32 %v229_v14  ;;  %v1380_v14 = vld [vmem:[%s1851_s3 + $0x11] ss:$0 sm:$0xff] }
 0x2ae   :  { %238 = vadd.xlane.f32.xlu0 %v237_v15 }
 0x2b3   :  { %v1576_v16 = vpop.eup %1393 }
 0x2b4   :  { %v240_v17 = vsel %vm206_vm4, %v1576_v16, 0.0 }
 0x2b5   :  { %241 = vadd.xlane.f32.xlu2 %v240_v17 }
 0x318   :  { %v236_v18 = vpop.xlane.xlu2 %235 }
 0x319   :  { %v233_v19 = vpop.xlane.xlu0 %232  ;;  %1395 = vrcp.f32 %v236_v18  ;;  %v269_v44 = vand.u32 2147483648, %v236_v18  ;;  %vm263_vm12 = vweird.f32 %v236_v18  ;;  %v267_v48 = vand.u32 2147483647, %v236_v18 }
 0x31a   :  { %1397 = vrcp.f32 %v233_v19  ;;  %v254_v28 = vand.u32 2147483648, %v233_v19  ;;  %v252_v30 = vand.u32 2147483647, %v233_v19  ;;  %vm248_vm8 = vweird.f32 %v233_v19 }
 0x31b   :  { %v270_v54 = vor.u32 1.1754944e-38, %v269_v44  ;;  %vm268_vm14 = vcmp.eq.f32.partialorder %v267_v48, 8.507059e+37 }
 0x31c   :  { %v255_v37 = vor.u32 1.1754944e-38, %v254_v28  ;;  %vm253_vm10 = vcmp.eq.f32.partialorder %v252_v30, 8.507059e+37 }
 0x31f   :  { %v1396_v20 = vpop.eup %1395 }
 0x320   :  { %v1398_v21 = vpop.eup %1397  ;;  %v259_v22 = vmul.f32 %v1396_v20, %v236_v18  ;;  %vm264_vm11 = vweird.f32 %v1396_v20 }
 0x321   :  { %v244_v23 = vmul.f32 %v1398_v21, %v233_v19  ;;  %v239_v24 = vpop.xlane.xlu0 %238  ;;  %vm249_vm7 = vweird.f32 %v1398_v21  ;;  %vm265_vm13 = vmor %vm263_vm12, %vm264_vm11 }
 0x322   :  { %v260_v25 = vsub.f32 1.0, %v259_v22  ;;  %1399 = vrcp.f32 %v239_v24  ;;  %vm250_vm9 = vmor %vm248_vm8, %vm249_vm7  ;;  %v284_v60 = vand.u32 2147483648, %v239_v24  ;;  %vm278_vm2 = vweird.f32 %v239_v24 }
 0x323   :  { %v245_v26 = vsub.f32 1.0, %v244_v23  ;;  %v282_v62 = vand.u32 2147483647, %v239_v24 }
 0x324   :  { %v261_v29 = vmul.f32 %v1396_v20, %v260_v25  ;;  %v285_v1 = vor.u32 1.1754944e-38, %v284_v60 }
 0x325   :  { %v246_v27 = vmul.f32 %v1398_v21, %v245_v26  ;;  %vm283_vm5 = vcmp.eq.f32.partialorder %v282_v62, 8.507059e+37 }
 0x326   :  { %v262_v42 = vadd.f32 %v1396_v20, %v261_v29 }
 0x327   :  { %v247_v33 = vadd.f32 %v1398_v21, %v246_v27 }
 0x328   :  { %v1400_v34 = vpop.eup %1399  ;;  %v242_v35 = vpop.xlane.xlu2 %241  ;;  %v266_v51 = vsel %vm265_vm13, %v1396_v20, %v262_v42 }
 0x329   :  { %v274_v38 = vmul.f32 %v1400_v34, %v239_v24  ;;  %1401 = vrcp.f32 %v242_v35  ;;  %v251_v39 = vsel %vm250_vm9, %v1398_v21, %v247_v33  ;;  %v271_v56 = vsel %vm268_vm14, %v270_v54, %v266_v51 }
 0x32a   :  { %v256_v46 = vsel %vm253_vm10, %v255_v37, %v251_v39  ;;  %vm279_vm15 = vweird.f32 %v1400_v34  ;;  %v272_v61 = vmul.f32 %v1567_v6, %v271_v56  ;;  %v299_v4 = vand.u32 2147483648, %v242_v35 }
 0x32b   :  { %v275_v45 = vsub.f32 1.0, %v274_v38  ;;  %v257_v47 = vmul.f32 %v1390_v8, %v256_v46  ;;  %vm280_vm3 = vmor %vm278_vm2, %vm279_vm15  ;;  %vm293_vm7 = vweird.f32 %v242_v35  ;;  %v297_v7 = vand.u32 2147483647, %v242_v35 }
 0x32c   :  { %v300_v8 = vor.u32 1.1754944e-38, %v299_v4 }
 0x32d   :  { %v276_v50 = vmul.f32 %v1400_v34, %v275_v45  ;;  %1313 = vmatmul.msk.f32.vlgmr.msra.gmra.mxu2 %vm206_vm4, %v257_v47  ;;  %vm298_vm9 = vcmp.eq.f32.partialorder %v297_v7, 8.507059e+37 }
 0x32f   :  { %v1402_v53 = vpop.eup %1401  ;;  %v277_v59 = vadd.f32 %v1400_v34, %v276_v50 }
 0x330   :  { %v289_v55 = vmul.f32 %v1402_v53, %v242_v35  ;;  %vm294_vm6 = vweird.f32 %v1402_v53 }
 0x331   :  { %v281_v0 = vsel %vm280_vm3, %v1400_v34, %v277_v59  ;;  %vm295_vm8 = vmor %vm293_vm7, %vm294_vm6 }
 0x332   :  { %v290_v57 = vsub.f32 1.0, %v289_v55  ;;  %v286_v2 = vsel %vm283_vm5, %v285_v1, %v281_v0 }
 0x333   :  { %v287_v5 = vmul.f32 %v1572_v13, %v286_v2  ;;  %v1317_v13 = vld [vmem:[%s1853_s2 + $0x40] sm:$0xff] }
 0x334   :  { %v291_v63 = vmul.f32 %v1402_v53, %v290_v57  ;;  %386 = vmatpush.msra.mxu3 %v1317_v13 }
 0x335   :  { %1314 = vmatmul.msk.f32.gmra.mxu2 %vm206_vm4, %v272_v61 }
 0x336   :  { %v292_v3 = vadd.f32 %v1402_v53, %v291_v63 }
 0x338   :  { %v296_v6 = vsel %vm295_vm8, %v1402_v53, %v292_v3 }
 0x339   :  { %v301_v9 = vsel %vm298_vm9, %v300_v8, %v296_v6 }
 0x33a   :  { %v302_v10 = vmul.f32 %v1576_v16, %v301_v9 }
 0x33d   :  { %1315 = vmatmul.msk.f32.gmra.mxu2 %vm206_vm4, %v287_v5 }
 0x345   :  { %1316 = vmatmul.msk.f32.gmra.mxu2 %vm206_vm4, %v302_v10 }
 0x3b0   :  { %v334_v15 = vpop.f32.mrf.mxu2 }
 0x3b1   :  { %v335_v16 = vadd.f32 %v1380_v14, %v334_v15 }
 0x3b3   :  { %v346_v17 = vmax.f32 %v335_v16, 0.0 }
 0x3b5   :  { %1325 = vmatmul.msk.f32.vlgmr.msra.gmra.mxu3 %vm79_vm1, %v346_v17 }
 0x3b8   :  { %v337_v18 = vpop.f32.mrf.mxu2 }
 0x3b9   :  { %v338_v19 = vadd.f32 %v1380_v14, %v337_v18 }
 0x3bb   :  { %v347_v20 = vmax.f32 %v338_v19, 0.0 }
 0x3bd   :  { %1326 = vmatmul.msk.f32.gmra.mxu3 %vm79_vm1, %v347_v20 }
 0x3c0   :  { %v340_v21 = vpop.f32.mrf.mxu2 }
 0x3c1   :  { %v341_v22 = vadd.f32 %v1380_v14, %v340_v21 }
 0x3c3   :  { %v348_v23 = vmax.f32 %v341_v22, 0.0 }
 0x3c5   :  { %1327 = vmatmul.msk.f32.gmra.mxu3 %vm79_vm1, %v348_v23 }
 0x3c8   :  { %v343_v24 = vpop.f32.mrf.mxu2 }
 0x3c9   :  { %v344_v25 = vadd.f32 %v1380_v14, %v343_v24 }
 0x3cb   :  { %v349_v26 = vmax.f32 %v344_v25, 0.0 }
 0x3cd   :  { %1328 = vmatmul.msk.f32.gmra.mxu3 %vm79_vm1, %v349_v26 }
 0x438   :  { %v388_v27 = vpop.f32.mrf.mxu3 }
 0x439   :  { %404 = vrot.lane.b32.xlu0 %v388_v27, %s1456_s0 }
 0x440   :  { %v391_v28 = vpop.f32.mrf.mxu3 }
 0x441   :  { %406 = vrot.lane.b32.xlu1 %v391_v28, %s1456_s0 }
 0x448   :  { %v394_v29 = vpop.f32.mrf.mxu3 }
 0x449   :  { %408 = vrot.lane.b32.xlu2 %v394_v29, %s1456_s0 }
 0x450   :  { %v397_v30 = vpop.f32.mrf.mxu3 }
 0x451   :  { %453 = vperm.xlu2 %1376, %v391_v28   ;;  %410 = vrot.lane.b32.xlu0 %v397_v30, %s1456_s0 }
 0x452   :  { %607 = vmatpush.msrb.mxu0 %v397_v30  ;;  %1369 = vmatpush.msrb.mxu1 %v397_v30 }
 0x454   :  { %608 = vmatpush.msrb.mxu0 %v394_v29  ;;  %1370 = vmatpush.msrb.mxu1 %v394_v29 }
 0x456   :  { %609 = vmatpush.msrb.mxu0 %v391_v28  ;;  %1371 = vmatpush.msrb.mxu1 %v391_v28 }
 0x458   :  { %610 = vmatpush.msrb.mxu0 %v388_v27  ;;  %1372 = vmatpush.msrb.mxu1 %v388_v27 }
 0x459   :  { %449 = vperm.xlu0 %1377, %v388_v27  }
 0x461   :  { %457 = vperm.xlu0 %1377, %v394_v29   ;;  %v1340_v29 = vld [vmem:[%s1853_s2 + $0xb8] sm:$0xff] }
 0x462   :  { %657 = vmatpush.msrb.mxu2 %v1340_v29 }
 0x469   :  { %461 = vperm.xlu0 %1377, %v397_v30   ;;  %v1339_v30 = vld [vmem:[%s1853_s2 + $0xb0] sm:$0xff] }
 0x46a   :  { %658 = vmatpush.msrb.mxu2 %v1339_v30 }
 0x4a3   :  { %v409_v33 = vpop.permute.xlu2 %408 }
 0x4ab   :  { %v405_v31 = vpop.permute.xlu0 %404  ;;  %v454_v36 = vpop.permute.xlu2 %453 }
 0x4ac   :  { %416 = vxpose.xlu2.b32.start [1/4] (short) (narrow) %v405_v31, 8 }
 0x4b3   :  { %v407_v32 = vpop.permute.xlu1 %406 }
 0x4b4   :  { %417 = vxpose.xlu2.b32.cont [2/4] (short) (narrow) %v407_v32, 8  ;;  %v1338_v32 = vld [vmem:[%s1853_s2 + $0xa8] sm:$0xff] }
 0x4b5   :  { %659 = vmatpush.msrb.mxu2 %v1338_v32 }
 0x4bc   :  { %418 = vxpose.xlu2.b32.cont [3/4] (short) (narrow) %v409_v33, 8 }
 0x4c3   :  { %v411_v34 = vpop.permute.xlu0 %410 }
 0x4c4   :  { %419 = vxpose.xlu2.b32.end [4/4] (short) (narrow) %v411_v34, 8 }
 0x4cb   :  { %v450_v35 = vpop.permute.xlu0 %449 }
 0x4d3   :  { %v458_v37 = vpop.permute.xlu0 %457 }
 0x4db   :  { %v462_v42 = vpop.permute.xlu0 %461 }
 0x545   :  { %v432_v38 = vpop.trf.xlu2 }
 0x546   :  { %v464_v39 = vperm.slane %v432_v38, 0  ;;  %v1337_v38 = vld [vmem:[%s1853_s2 + $0xa0] sm:$0xff] }
 0x547   :  { %660 = vmatpush.msrb.mxu2 %v1337_v38 }
 0x548   :  { %v466_v43 = vadd.f32 %v464_v39, %v454_v36  ;;  %v465_v44 = vadd.f32 %v464_v39, %v450_v35  ;;  %v468_v45 = vadd.f32 %v464_v39, %v462_v42  ;;  %v467_v46 = vadd.f32 %v464_v39, %v458_v37 }
 0x54a   :  { %vm470_vm10 = vcmp.gt.f32.partialorder %v466_v43, 0.0  ;;  %v474_v47 = vmul.f32 0.2, %v466_v43  ;;  %vm469_vm11 = vcmp.gt.f32.partialorder %v465_v44, 0.0  ;;  %v473_v48 = vmul.f32 0.2, %v465_v44 }
 0x54b   :  { %vm472_vm12 = vcmp.gt.f32.partialorder %v468_v45, 0.0  ;;  %v476_v49 = vmul.f32 0.2, %v468_v45  ;;  %v475_v53 = vmul.f32 0.2, %v467_v46  ;;  %vm471_vm13 = vcmp.gt.f32.partialorder %v467_v46, 0.0 }
 0x54c   :  { %v478_v50 = vsel %vm470_vm10, %v466_v43, %v474_v47  ;;  %v477_v51 = vsel %vm469_vm11, %v465_v44, %v473_v48  ;;  %v1336_v44 = vld [vmem:[%s1853_s2 + $0x98] sm:$0xff] }
 0x54d   :  { %v482_v54 = vadd.f32 %v478_v50, %v1542_v40  ;;  %v481_v55 = vadd.f32 %v477_v51, %v1547_v41  ;;  %v480_v56 = vsel %vm472_vm12, %v468_v45, %v476_v49  ;;  %v479_v62 = vsel %vm471_vm13, %v467_v46, %v475_v53  ;;  %661 = vmatpush.msrb.mxu2 %v1336_v44 }
 0x54e   :  { %v484_v57 = vadd.f32 %v480_v56, %v1563_v58  ;;  %v483_v63 = vadd.f32 %v479_v62, %v1556_v52 }
 0x54f   :  { %v488_v59 = vsel %vm206_vm4, %v482_v54, -inf  ;;  %v485_v60 = vsel %vm206_vm4, %v481_v55, -inf }
 0x550   :  { %489 = vmax.xlane.f32.xlu1 %v488_v59  ;;  %486 = vmax.xlane.f32.xlu0 %v485_v60  ;;  %v494_v61 = vsel %vm206_vm4, %v484_v57, -inf  ;;  %v491_v0 = vsel %vm206_vm4, %v483_v63, -inf }
 0x551   :  { %495 = vmax.xlane.f32.xlu2 %v494_v61 }
 0x558   :  { %492 = vmax.xlane.f32.xlu0 %v491_v0 }
 0x5c3   :  { %v487_v1 = vpop.xlane.xlu0 %486  ;;  %v490_v3 = vpop.xlane.xlu1 %489 }
 0x5c4   :  { %v497_v2 = vsub.f32 %v481_v55, %v487_v1  ;;  %v498_v5 = vsub.f32 %v482_v54, %v490_v3  ;;  %v496_v12 = vpop.xlane.xlu2 %495 }
 0x5c5   :  { %v500_v14 = vsub.f32 %v484_v57, %v496_v12 }
 0x5c6   :  { %v501_v4 = vmul.f32 1.442695, %v497_v2  ;;  %v503_v7 = vmul.f32 1.442695, %v498_v5 }
 0x5c7   :  { %v507_v16 = vmul.f32 1.442695, %v500_v14  ;;  %v1335_v14 = vld [vmem:[%s1853_s2 + $0x90] sm:$0xff] }
 0x5c8   :  { %1403 = vpow2.f32 %v501_v4  ;;  %662 = vmatpush.msrb.mxu2 %v1335_v14 }
 0x5c9   :  { %1405 = vpow2.f32 %v503_v7 }
 0x5cb   :  { %v493_v6 = vpop.xlane.xlu0 %492 }
 0x5cc   :  { %v499_v9 = vsub.f32 %v483_v63, %v493_v6 }
 0x5ce   :  { %v1404_v8 = vpop.eup %1403  ;;  %v505_v11 = vmul.f32 1.442695, %v499_v9 }
 0x5cf   :  { %v509_v10 = vsel %vm206_vm4, %v1404_v8, 0.0  ;;  %v1631_v13 = vpop.eup %1405 }
 0x5d0   :  { %510 = vadd.xlane.f32.xlu0 %v509_v10  ;;  %1407 = vpow2.f32 %v505_v11  ;;  %v512_v15 = vsel %vm206_vm4, %v1631_v13, 0.0 }
 0x5d1   :  { %1409 = vpow2.f32 %v507_v16  ;;  %v1333_v16 = vld [vmem:[%s1853_s2 + $0x80] sm:$0xff] }
 0x5d6   :  { %v1635_v17 = vpop.eup %1407 }
 0x5d7   :  { %v515_v18 = vsel %vm206_vm4, %v1635_v17, 0.0  ;;  %v1639_v19 = vpop.eup %1409 }
 0x5d8   :  { %513 = vadd.xlane.f32.xlu0 %v512_v15  ;;  %v518_v20 = vsel %vm206_vm4, %v1639_v19, 0.0  ;;  %v1334_v15 = vld [vmem:[%s1853_s2 + $0x88] sm:$0xff] }
 0x5d9   :  { %663 = vmatpush.msrb.mxu2 %v1334_v15 }
 0x5db   :  { %664 = vmatpush.msrb.mxu2 %v1333_v16 }
 0x5e0   :  { %516 = vadd.xlane.f32.xlu0 %v515_v18 }
 0x5e8   :  { %519 = vadd.xlane.f32.xlu0 %v518_v20 }
 0x643   :  { %v511_v21 = vpop.xlane.xlu0 %510 }
 0x644   :  { %1411 = vrcp.f32 %v511_v21  ;;  %v532_v26 = vand.u32 2147483648, %v511_v21  ;;  %v530_v28 = vand.u32 2147483647, %v511_v21  ;;  %vm526_vm15 = vweird.f32 %v511_v21 }
 0x646   :  { %v533_v34 = vor.u32 1.1754944e-38, %v532_v26  ;;  %vm531_vm3 = vcmp.eq.f32.partialorder %v530_v28, 8.507059e+37 }
 0x64a   :  { %v1412_v22 = vpop.eup %1411 }
 0x64b   :  { %v522_v23 = vmul.f32 %v1412_v22, %v511_v21  ;;  %v514_v24 = vpop.xlane.xlu0 %513  ;;  %vm527_vm14 = vweird.f32 %v1412_v22 }
 0x64c   :  { %1413 = vrcp.f32 %v514_v24  ;;  %vm528_vm2 = vmor %vm526_vm15, %vm527_vm14  ;;  %v547_v46 = vand.u32 2147483648, %v514_v24  ;;  %v545_v47 = vand.u32 2147483647, %v514_v24  ;;  %vm541_vm6 = vweird.f32 %v514_v24 }
 0x64d   :  { %v523_v25 = vsub.f32 1.0, %v522_v23 }
 0x64e   :  { %v548_v50 = vor.u32 1.1754944e-38, %v547_v46  ;;  %vm546_vm8 = vcmp.eq.f32.partialorder %v545_v47, 8.507059e+37 }
 0x64f   :  { %v524_v27 = vmul.f32 %v1412_v22, %v523_v25 }
 0x651   :  { %v525_v31 = vadd.f32 %v1412_v22, %v524_v27 }
 0x652   :  { %v1414_v33 = vpop.eup %1413 }
 0x653   :  { %v537_v35 = vmul.f32 %v1414_v33, %v514_v24  ;;  %v517_v36 = vpop.xlane.xlu0 %516  ;;  %v529_v37 = vsel %vm528_vm2, %v1412_v22, %v525_v31  ;;  %vm542_vm5 = vweird.f32 %v1414_v33 }
 0x654   :  { %1415 = vrcp.f32 %v517_v36  ;;  %v534_v39 = vsel %vm531_vm3, %v533_v34, %v529_v37  ;;  %vm543_vm7 = vmor %vm541_vm6, %vm542_vm5  ;;  %v562_v57 = vand.u32 2147483648, %v517_v36  ;;  %v560_v61 = vand.u32 2147483647, %v517_v36 }
 0x655   :  { %v538_v42 = vsub.f32 1.0, %v537_v35  ;;  %v535_v43 = vmul.f32 %v1404_v8, %v534_v39  ;;  %vm556_vm10 = vweird.f32 %v517_v36 }
 0x656   :  { %v563_v0 = vor.u32 1.1754944e-38, %v562_v57  ;;  %vm561_vm12 = vcmp.eq.f32.partialorder %v560_v61, 8.507059e+37 }
 0x657   :  { %v539_v45 = vmul.f32 %v1414_v33, %v538_v42  ;;  %1329 = vmatmul.msk.f32.vlgmr.msrb.gmra.mxu0 %vm206_vm4, %v535_v43 }
 0x659   :  { %v540_v48 = vadd.f32 %v1414_v33, %v539_v45 }
 0x65a   :  { %v1416_v49 = vpop.eup %1415 }
 0x65b   :  { %v552_v51 = vmul.f32 %v1416_v49, %v517_v36  ;;  %v520_v53 = vpop.xlane.xlu0 %519  ;;  %v544_v54 = vsel %vm543_vm7, %v1414_v33, %v540_v48  ;;  %vm557_vm9 = vweird.f32 %v1416_v49 }
 0x65c   :  { %1417 = vrcp.f32 %v520_v53  ;;  %v549_v56 = vsel %vm546_vm8, %v548_v50, %v544_v54  ;;  %vm558_vm11 = vmor %vm556_vm10, %vm557_vm9  ;;  %v577_v7 = vand.u32 2147483648, %v520_v53  ;;  %v575_v8 = vand.u32 2147483647, %v520_v53 }
 0x65d   :  { %v553_v55 = vsub.f32 1.0, %v552_v51  ;;  %v550_v59 = vmul.f32 %v1631_v13, %v549_v56  ;;  %vm571_vm14 = vweird.f32 %v520_v53 }
 0x65e   :  { %v578_v10 = vor.u32 1.1754944e-38, %v577_v7  ;;  %vm576_vm2 = vcmp.eq.f32.partialorder %v575_v8, 8.507059e+37 }
 0x65f   :  { %v554_v60 = vmul.f32 %v1416_v49, %v553_v55  ;;  %1330 = vmatmul.msk.f32.gmra.mxu0 %vm206_vm4, %v550_v59 }
 0x661   :  { %v555_v62 = vadd.f32 %v1416_v49, %v554_v60 }
 0x662   :  { %v1418_v63 = vpop.eup %1417 }
 0x663   :  { %v567_v1 = vmul.f32 %v1418_v63, %v520_v53  ;;  %v559_v2 = vsel %vm558_vm11, %v1416_v49, %v555_v62  ;;  %vm572_vm13 = vweird.f32 %v1418_v63 }
 0x664   :  { %v564_v3 = vsel %vm561_vm12, %v563_v0, %v559_v2  ;;  %vm573_vm15 = vmor %vm571_vm14, %vm572_vm13 }
 0x665   :  { %v568_v4 = vsub.f32 1.0, %v567_v1  ;;  %v565_v5 = vmul.f32 %v1635_v17, %v564_v3  ;;  %v1381_v17 = vld [vmem:[%s1851_s3 + $0x12] ss:$0 sm:$0xff] }
 0x667   :  { %v569_v6 = vmul.f32 %v1418_v63, %v568_v4  ;;  %1331 = vmatmul.msk.f32.gmra.mxu0 %vm206_vm4, %v565_v5 }
 0x669   :  { %v570_v9 = vadd.f32 %v1418_v63, %v569_v6 }
 0x66b   :  { %v574_v11 = vsel %vm573_vm15, %v1418_v63, %v570_v9 }
 0x66c   :  { %v579_v12 = vsel %vm576_vm2, %v578_v10, %v574_v11 }
 0x66d   :  { %v580_v13 = vmul.f32 %v1639_v19, %v579_v12 }
 0x66f   :  { %1332 = vmatmul.msk.f32.vlgmr.msrb.gmra.mxu1 %vm206_vm4, %v580_v13 }
 0x6d4   :  { %v612_v18 = vpop.f32.mrf.mxu0 }
 0x6d5   :  { %v613_v19 = vadd.f32 %v1381_v17, %v612_v18 }
 0x6d7   :  { %v624_v20 = vmax.f32 %v613_v19, 0.0 }
 0x6d9   :  { %1341 = vmatmul.msk.f32.vlgmr.msrb.gmra.mxu2 %vm79_vm1, %v624_v20 }
 0x6dc   :  { %v615_v21 = vpop.f32.mrf.mxu0 }
 0x6dd   :  { %v616_v22 = vadd.f32 %v1381_v17, %v615_v21 }
 0x6df   :  { %v625_v23 = vmax.f32 %v616_v22, 0.0 }
 0x6e1   :  { %1342 = vmatmul.msk.f32.gmra.mxu2 %vm79_vm1, %v625_v23 }
 0x6e4   :  { %v618_v24 = vpop.f32.mrf.mxu0 }
 0x6e5   :  { %v619_v25 = vadd.f32 %v1381_v17, %v618_v24 }
 0x6e7   :  { %v626_v26 = vmax.f32 %v619_v25, 0.0 }
 0x6e9   :  { %1343 = vmatmul.msk.f32.gmra.mxu2 %vm79_vm1, %v626_v26 }
 0x6ec   :  { %v621_v27 = vpop.f32.mrf.mxu1 }
 0x6ed   :  { %v622_v28 = vadd.f32 %v1381_v17, %v621_v27 }
 0x6ef   :  { %v627_v29 = vmax.f32 %v622_v28, 0.0 }
 0x6f1   :  { %1344 = vmatmul.msk.f32.gmra.mxu2 %vm79_vm1, %v627_v29 }
 0x75c   :  { %v666_v30 = vpop.f32.mrf.mxu2 }
 0x75d   :  { %682 = vrot.lane.b32.xlu0 %v666_v30, %s1456_s0 }
 0x764   :  { %v669_v31 = vpop.f32.mrf.mxu2 }
 0x765   :  { %684 = vrot.lane.b32.xlu1 %v669_v31, %s1456_s0 }
 0x76c   :  { %v672_v32 = vpop.f32.mrf.mxu2 }
 0x76d   :  { %731 = vperm.xlu1 %1378, %v669_v31   ;;  %686 = vrot.lane.b32.xlu0 %v672_v32, %s1456_s0 }
 0x774   :  { %v675_v33 = vpop.f32.mrf.mxu2 }
 0x775   :  { %727 = vperm.xlu0 %1377, %v666_v30   ;;  %688 = vrot.lane.b32.xlu1 %v675_v33, %s1456_s0 }
 0x776   :  { %885 = vmatpush.msra.mxu1 %v675_v33 }
 0x778   :  { %886 = vmatpush.msra.mxu1 %v672_v32 }
 0x77a   :  { %887 = vmatpush.msra.mxu1 %v669_v31 }
 0x77c   :  { %888 = vmatpush.msra.mxu1 %v666_v30 }
 0x77d   :  { %735 = vperm.xlu0 %1377, %v672_v32  }
 0x785   :  { %739 = vperm.xlu0 %1377, %v675_v33  }
 0x7cf   :  { %v683_v34 = vpop.permute.xlu0 %682 }
 0x7d0   :  { %694 = vxpose.xlu1.b32.start [1/4] (short) (narrow) %v683_v34, 8  ;;  %v1356_v34 = vld [vmem:[%s1853_s2 + $0xf8] sm:$0xff] }
 0x7d1   :  { %935 = vmatpush.msrb.mxu3 %v1356_v34 }
 0x7d7   :  { %v685_v35 = vpop.permute.xlu1 %684 }
 0x7d8   :  { %695 = vxpose.xlu1.b32.cont [2/4] (short) (narrow) %v685_v35, 8  ;;  %v1355_v35 = vld [vmem:[%s1853_s2 + $0xf0] sm:$0xff] }
 0x7d9   :  { %936 = vmatpush.msrb.mxu3 %v1355_v35 }
 0x7df   :  { %v732_v36 = vpop.permute.xlu1 %731  ;;  %v687_v37 = vpop.permute.xlu0 %686 }
 0x7e0   :  { %696 = vxpose.xlu1.b32.cont [3/4] (short) (narrow) %v687_v37, 8  ;;  %v1354_v37 = vld [vmem:[%s1853_s2 + $0xe8] sm:$0xff] }
 0x7e1   :  { %937 = vmatpush.msrb.mxu3 %v1354_v37 }
 0x7e7   :  { %v689_v38 = vpop.permute.xlu1 %688  ;;  %v728_v39 = vpop.permute.xlu0 %727 }
 0x7e8   :  { %697 = vxpose.xlu1.b32.end [4/4] (short) (narrow) %v689_v38, 8 }
 0x7ef   :  { %v736_v42 = vpop.permute.xlu0 %735 }
 0x7f7   :  { %v740_v45 = vpop.permute.xlu0 %739 }
 0x874   :  { %v710_v43 = vpop.trf.xlu1 }
 0x875   :  { %v742_v44 = vperm.slane %v710_v43, 0 }
 0x877   :  { %v744_v46 = vadd.f32 %v742_v44, %v732_v36  ;;  %v743_v47 = vadd.f32 %v742_v44, %v728_v39  ;;  %v745_v48 = vadd.f32 %v742_v44, %v736_v42  ;;  %v746_v49 = vadd.f32 %v742_v44, %v740_v45  ;;  %v1353_v45 = vld [vmem:[%s1853_s2 + $0xe0] sm:$0xff] }
 0x878   :  { %938 = vmatpush.msrb.mxu3 %v1353_v45 }
 0x879   :  { %vm748_vm3 = vcmp.gt.f32.partialorder %v744_v46, 0.0  ;;  %v752_v50 = vmul.f32 0.2, %v744_v46  ;;  %vm747_vm5 = vcmp.gt.f32.partialorder %v743_v47, 0.0  ;;  %v751_v51 = vmul.f32 0.2, %v743_v47 }
 0x87a   :  { %v753_v55 = vmul.f32 0.2, %v745_v48  ;;  %v754_v56 = vmul.f32 0.2, %v746_v49  ;;  %vm749_vm6 = vcmp.gt.f32.partialorder %v745_v48, 0.0  ;;  %vm750_vm7 = vcmp.gt.f32.partialorder %v746_v49, 0.0 }
 0x87b   :  { %v756_v53 = vsel %vm748_vm3, %v744_v46, %v752_v50  ;;  %v755_v54 = vsel %vm747_vm5, %v743_v47, %v751_v51 }
 0x87c   :  { %v760_v57 = vadd.f32 %v756_v53, %v1542_v40  ;;  %v759_v59 = vadd.f32 %v755_v54, %v1547_v41  ;;  %v757_v62 = vsel %vm749_vm6, %v745_v48, %v753_v55  ;;  %v758_v63 = vsel %vm750_vm7, %v746_v49, %v754_v56  ;;  %v1352_v53 = vld [vmem:[%s1853_s2 + $0xd8] sm:$0xff] }
 0x87d   :  { %v761_v0 = vadd.f32 %v757_v62, %v1556_v52  ;;  %v762_v1 = vadd.f32 %v758_v63, %v1563_v58  ;;  %939 = vmatpush.msrb.mxu3 %v1352_v53 }
 0x87e   :  { %v766_v60 = vsel %vm206_vm4, %v760_v57, -inf  ;;  %v763_v61 = vsel %vm206_vm4, %v759_v59, -inf }
 0x87f   :  { %767 = vmax.xlane.f32.xlu2 %v766_v60  ;;  %764 = vmax.xlane.f32.xlu0 %v763_v61  ;;  %v769_v2 = vsel %vm206_vm4, %v761_v0, -inf  ;;  %v772_v40 = vsel %vm206_vm4, %v762_v1, -inf }
 0x887   :  { %770 = vmax.xlane.f32.xlu2 %v769_v2  ;;  %773 = vmax.xlane.f32.xlu0 %v772_v40 }
 0x8f2   :  { %v768_v41 = vpop.xlane.xlu2 %767  ;;  %v765_v3 = vpop.xlane.xlu0 %764 }
 0x8f3   :  { %v776_v4 = vsub.f32 %v760_v57, %v768_v41  ;;  %v775_v5 = vsub.f32 %v759_v59, %v765_v3 }
 0x8f5   :  { %v781_v7 = vmul.f32 1.442695, %v776_v4  ;;  %v779_v6 = vmul.f32 1.442695, %v775_v5 }
 0x8f7   :  { %1419 = vpow2.f32 %v781_v7 }
 0x8f8   :  { %1421 = vpow2.f32 %v779_v6 }
 0x8fa   :  { %v771_v8 = vpop.xlane.xlu2 %770  ;;  %v774_v9 = vpop.xlane.xlu0 %773 }
 0x8fb   :  { %v777_v10 = vsub.f32 %v761_v0, %v771_v8  ;;  %v778_v52 = vsub.f32 %v762_v1, %v774_v9 }
 0x8fd   :  { %v1693_v11 = vpop.eup %1419  ;;  %v783_v58 = vmul.f32 1.442695, %v777_v10  ;;  %v785_v12 = vmul.f32 1.442695, %v778_v52  ;;  %v1351_v52 = vld [vmem:[%s1853_s2 + $0xd0] sm:$0xff] }
 0x8fe   :  { %v1422_v13 = vpop.eup %1421  ;;  %v790_v14 = vsel %vm206_vm4, %v1693_v11, 0.0  ;;  %940 = vmatpush.msrb.mxu3 %v1351_v52 }
 0x8ff   :  { %1423 = vpow2.f32 %v783_v58  ;;  %791 = vadd.xlane.f32.xlu0 %v790_v14  ;;  %v787_v15 = vsel %vm206_vm4, %v1422_v13, 0.0  ;;  %v1349_v58 = vld [vmem:[%s1853_s2 + $0xc0] sm:$0xff] }
 0x900   :  { %1425 = vpow2.f32 %v785_v12  ;;  %788 = vadd.xlane.f32.xlu2 %v787_v15  ;;  %v1382_v12 = vld [vmem:[%s1851_s3 + $0x13] ss:$0 sm:$0xff] }
 0x905   :  { %v1698_v16 = vpop.eup %1423 }
 0x906   :  { %v1700_v17 = vpop.eup %1425  ;;  %v793_v18 = vsel %vm206_vm4, %v1698_v16, 0.0 }
 0x907   :  { %v796_v19 = vsel %vm206_vm4, %v1700_v17, 0.0 }
 0x908   :  { %794 = vadd.xlane.f32.xlu2 %v793_v18  ;;  %797 = vadd.xlane.f32.xlu0 %v796_v19 }
 0x972   :  { %v792_v20 = vpop.xlane.xlu0 %791 }
 0x973   :  { %v789_v21 = vpop.xlane.xlu2 %788  ;;  %1427 = vrcp.f32 %v792_v20  ;;  %v825_v48 = vand.u32 2147483648, %v792_v20  ;;  %vm819_vm13 = vweird.f32 %v792_v20  ;;  %v823_v51 = vand.u32 2147483647, %v792_v20 }
 0x974   :  { %1429 = vrcp.f32 %v789_v21  ;;  %v808_v30 = vand.u32 2147483647, %v789_v21  ;;  %v810_v31 = vand.u32 2147483648, %v789_v21  ;;  %vm804_vm9 = vweird.f32 %v789_v21 }
 0x975   :  { %v826_v57 = vor.u32 1.1754944e-38, %v825_v48  ;;  %vm824_vm15 = vcmp.eq.f32.partialorder %v823_v51, 8.507059e+37  ;;  %v1451_v48 = vld [vmem:[%s1854_s1 + $0x10] sm:$0xff] }
 0x976   :  { %vm809_vm11 = vcmp.eq.f32.partialorder %v808_v30, 8.507059e+37  ;;  %v811_v39 = vor.u32 1.1754944e-38, %v810_v31 }
 0x979   :  { %v1428_v22 = vpop.eup %1427 }
 0x97a   :  { %v1430_v23 = vpop.eup %1429  ;;  %v815_v24 = vmul.f32 %v1428_v22, %v792_v20  ;;  %vm820_vm12 = vweird.f32 %v1428_v22 }
 0x97b   :  { %v800_v25 = vmul.f32 %v1430_v23, %v789_v21  ;;  %v795_v26 = vpop.xlane.xlu2 %794  ;;  %v1706_v27 = vpop.xlane.xlu0 %797  ;;  %vm805_vm8 = vweird.f32 %v1430_v23  ;;  %vm821_vm14 = vmor %vm819_vm13, %vm820_vm12 }
 0x97c   :  { %v816_v28 = vsub.f32 1.0, %v815_v24  ;;  %1431 = vrcp.f32 %v795_v26  ;;  %vm806_vm10 = vmor %vm804_vm9, %vm805_vm8  ;;  %v840_v62 = vand.u32 2147483648, %v795_v26  ;;  %vm834_vm3 = vweird.f32 %v795_v26 }
 0x97d   :  { %v801_v29 = vsub.f32 1.0, %v800_v25  ;;  %1433 = vrcp.f32 %v1706_v27  ;;  %v838_v0 = vand.u32 2147483647, %v795_v26  ;;  %v855_v4 = vand.u32 2147483648, %v1706_v27 }
 0x97e   :  { %v817_v33 = vmul.f32 %v1428_v22, %v816_v28  ;;  %v841_v40 = vor.u32 1.1754944e-38, %v840_v62  ;;  %vm849_vm8 = vweird.f32 %v1706_v27  ;;  %v853_v7 = vand.u32 2147483647, %v1706_v27 }
 0x97f   :  { %v802_v32 = vmul.f32 %v1430_v23, %v801_v29  ;;  %vm839_vm6 = vcmp.eq.f32.partialorder %v838_v0, 8.507059e+37  ;;  %v856_v8 = vor.u32 1.1754944e-38, %v855_v4  ;;  %v1454_v0 = vld [vmem:[%s1854_s1 + $0x18] sm:$0xff] }
 0x980   :  { %v818_v44 = vadd.f32 %v1428_v22, %v817_v33 }
 0x981   :  { %v803_v36 = vadd.f32 %v1430_v23, %v802_v32 }
 0x982   :  { %v1432_v38 = vpop.eup %1431  ;;  %v822_v56 = vsel %vm821_vm14, %v1428_v22, %v818_v44 }
 0x983   :  { %v807_v42 = vsel %vm806_vm10, %v1430_v23, %v803_v36  ;;  %v830_v43 = vmul.f32 %v1432_v38, %v795_v26  ;;  %v1434_v46 = vpop.eup %1433  ;;  %v827_v59 = vsel %vm824_vm15, %v826_v57, %v822_v56  ;;  %vm835_vm2 = vweird.f32 %v1432_v38 }
 0x984   :  { %v812_v47 = vsel %vm809_vm11, %v811_v39, %v807_v42  ;;  %v845_v55 = vmul.f32 %v1434_v46, %v1706_v27  ;;  %v828_v63 = vmul.f32 %v1693_v11, %v827_v59  ;;  %vm836_vm5 = vmor %vm834_vm3, %vm835_vm2  ;;  %vm850_vm7 = vweird.f32 %v1434_v46  ;;  %v1350_v11 = vld [vmem:[%s1853_s2 + $0xc8] sm:$0xff] }
 0x985   :  { %v831_v49 = vsub.f32 1.0, %v830_v43  ;;  %v813_v50 = vmul.f32 %v1422_v13, %v812_v47  ;;  %vm851_vm9 = vmor %vm849_vm8, %vm850_vm7  ;;  %vm854_vm10 = vcmp.eq.f32.partialorder %v853_v7, 8.507059e+37  ;;  %941 = vmatpush.msrb.mxu3 %v1350_v11  ;;  %v1453_v59 = vld [vmem:[%s1854_s1 + $0x8] sm:$0xff] }
 0x986   :  { %v846_v60 = vsub.f32 1.0, %v845_v55 }
 0x987   :  { %v832_v54 = vmul.f32 %v1432_v38, %v831_v49  ;;  %1345 = vmatmul.msk.f32.vlgmr.msra.gmra.mxu1 %vm206_vm4, %v813_v50  ;;  %942 = vmatpush.msrb.mxu3 %v1349_v58  ;;  %v1452_v50 = vld [vmem:[%s1854_s1] sm:$0xff] }
 0x988   :  { %v847_v1 = vmul.f32 %v1434_v46, %v846_v60 }
 0x989   :  { %v833_v61 = vadd.f32 %v1432_v38, %v832_v54 }
 0x98a   :  { %v848_v3 = vadd.f32 %v1434_v46, %v847_v1 }
 0x98b   :  { %v837_v2 = vsel %vm836_vm5, %v1432_v38, %v833_v61 }
 0x98c   :  { %v842_v41 = vsel %vm839_vm6, %v841_v40, %v837_v2  ;;  %v852_v6 = vsel %vm851_vm9, %v1434_v46, %v848_v3 }
 0x98d   :  { %v843_v5 = vmul.f32 %v1698_v16, %v842_v41  ;;  %v857_v9 = vsel %vm854_vm10, %v856_v8, %v852_v6 }
 0x98e   :  { %v858_v10 = vmul.f32 %v1700_v17, %v857_v9 }
 0x98f   :  { %1346 = vmatmul.msk.f32.gmra.mxu1 %vm206_vm4, %v828_v63 }
 0x997   :  { %1347 = vmatmul.msk.f32.gmra.mxu1 %vm206_vm4, %v843_v5 }
 0x99f   :  { %1348 = vmatmul.msk.f32.gmra.mxu1 %vm206_vm4, %v858_v10 }
 0xa04   :  { %v890_v13 = vpop.f32.mrf.mxu1 }
 0xa05   :  { %v891_v14 = vadd.f32 %v1382_v12, %v890_v13 }
 0xa07   :  { %v902_v15 = vmax.f32 %v891_v14, 0.0 }
 0xa09   :  { %1357 = vmatmul.msk.f32.vlgmr.msrb.gmra.mxu3 %vm79_vm1, %v902_v15 }
 0xa0c   :  { %v893_v16 = vpop.f32.mrf.mxu1 }
 0xa0d   :  { %v894_v17 = vadd.f32 %v1382_v12, %v893_v16 }
 0xa0f   :  { %v903_v18 = vmax.f32 %v894_v17, 0.0 }
 0xa11   :  { %1358 = vmatmul.msk.f32.gmra.mxu3 %vm79_vm1, %v903_v18 }
 0xa14   :  { %v896_v19 = vpop.f32.mrf.mxu1 }
 0xa15   :  { %v897_v20 = vadd.f32 %v1382_v12, %v896_v19 }
 0xa17   :  { %v904_v21 = vmax.f32 %v897_v20, 0.0 }
 0xa19   :  { %1359 = vmatmul.msk.f32.gmra.mxu3 %vm79_vm1, %v904_v21 }
 0xa1c   :  { %v899_v22 = vpop.f32.mrf.mxu1 }
 0xa1d   :  { %v900_v23 = vadd.f32 %v1382_v12, %v899_v22 }
 0xa1f   :  { %v905_v24 = vmax.f32 %v900_v23, 0.0 }
 0xa21   :  { %1360 = vmatmul.msk.f32.gmra.mxu3 %vm79_vm1, %v905_v24 }
 0xa8c   :  { %v944_v25 = vpop.f32.mrf.mxu3 }
 0xa8d   :  { %960 = vrot.lane.b32.xlu2 %v944_v25, %s1456_s0 }
 0xa94   :  { %v947_v26 = vpop.f32.mrf.mxu3 }
 0xa95   :  { %1009 = vperm.xlu2 %1376, %v947_v26   ;;  %962 = vrot.lane.b32.xlu0 %v947_v26, %s1456_s0 }
 0xa9c   :  { %v950_v27 = vpop.f32.mrf.mxu3 }
 0xa9d   :  { %1005 = vperm.xlu0 %1377, %v944_v25   ;;  %964 = vrot.lane.b32.xlu1 %v950_v27, %s1456_s0 }
 0xaa4   :  { %v953_v28 = vpop.f32.mrf.mxu3 }
 0xaa5   :  { %1013 = vperm.xlu0 %1377, %v950_v27   ;;  %966 = vrot.lane.b32.xlu2 %v953_v28, %s1456_s0 }
 0xaa6   :  { %1163 = vmatpush.msra.mxu0 %v953_v28 }
 0xaa8   :  { %1164 = vmatpush.msra.mxu0 %v950_v27 }
 0xaaa   :  { %1165 = vmatpush.msra.mxu0 %v947_v26 }
 0xaac   :  { %1166 = vmatpush.msra.mxu0 %v944_v25 }
 0xaad   :  { %1017 = vperm.xlu0 %1377, %v953_v28  }
 0xae7   :  { %v961_v29 = vpop.permute.xlu2 %960 }
 0xae8   :  { %972 = vxpose.xlu2.b32.start [1/4] (short) (narrow) %v961_v29, 8 }
 0xaef   :  { %v1010_v31 = vpop.permute.xlu2 %1009 }
 0xaff   :  { %v967_v33 = vpop.permute.xlu2 %966 }
 0xb07   :  { %v963_v30 = vpop.permute.xlu0 %962 }
 0xb08   :  { %973 = vxpose.xlu2.b32.cont [2/4] (short) (narrow) %v963_v30, 8 }
 0xb0f   :  { %v965_v32 = vpop.permute.xlu1 %964  ;;  %v1006_v34 = vpop.permute.xlu0 %1005 }
 0xb10   :  { %974 = vxpose.xlu2.b32.cont [3/4] (short) (narrow) %v965_v32, 8 }
 0xb17   :  { %v1014_v35 = vpop.permute.xlu0 %1013 }
 0xb18   :  { %975 = vxpose.xlu2.b32.end [4/4] (short) (narrow) %v967_v33, 8 }
 0xb1f   :  { %v1018_v53 = vpop.permute.xlu0 %1017 }
 0xb99   :  { %v988_v36 = vpop.trf.xlu2 }
 0xb9a   :  { %v1020_v37 = vperm.slane %v988_v36, 0 }
 0xb9c   :  { %v1023_v38 = vadd.f32 %v1020_v37, %v1014_v35  ;;  %v1021_v39 = vadd.f32 %v1020_v37, %v1006_v34  ;;  %v1022_v42 = vadd.f32 %v1020_v37, %v1010_v31  ;;  %v1024_v57 = vadd.f32 %v1020_v37, %v1018_v53 }
 0xb9e   :  { %vm1027_vm11 = vcmp.gt.f32.partialorder %v1023_v38, 0.0  ;;  %v1031_v43 = vmul.f32 0.2, %v1023_v38  ;;  %vm1025_vm12 = vcmp.gt.f32.partialorder %v1021_v39, 0.0  ;;  %v1029_v44 = vmul.f32 0.2, %v1021_v39 }
 0xb9f   :  { %v1030_v47 = vmul.f32 0.2, %v1022_v42  ;;  %vm1026_vm13 = vcmp.gt.f32.partialorder %v1022_v42, 0.0  ;;  %v1032_v61 = vmul.f32 0.2, %v1024_v57  ;;  %vm1028_vm14 = vcmp.gt.f32.partialorder %v1024_v57, 0.0 }
 0xba0   :  { %v1035_v45 = vsel %vm1027_vm11, %v1023_v38, %v1031_v43  ;;  %v1033_v46 = vsel %vm1025_vm12, %v1021_v39, %v1029_v44 }
 0xba1   :  { %v1039_v49 = vadd.f32 %v1451_v48, %v1035_v45  ;;  %v1037_v51 = vadd.f32 %v1452_v50, %v1033_v46  ;;  %v1034_v56 = vsel %vm1026_vm13, %v1022_v42, %v1030_v47  ;;  %v1036_v63 = vsel %vm1028_vm14, %v1024_v57, %v1032_v61 }
 0xba2   :  { %v1038_v60 = vadd.f32 %v1453_v59, %v1034_v56  ;;  %v1040_v1 = vadd.f32 %v1454_v0, %v1036_v63 }
 0xba3   :  { %v1047_v54 = vsel %vm206_vm4, %v1039_v49, -inf  ;;  %v1041_v55 = vsel %vm206_vm4, %v1037_v51, -inf }
 0xba4   :  { %1048 = vmax.xlane.f32.xlu1 %v1047_v54  ;;  %1042 = vmax.xlane.f32.xlu0 %v1041_v55  ;;  %v1044_v62 = vsel %vm206_vm4, %v1038_v60, -inf  ;;  %v1050_v2 = vsel %vm206_vm4, %v1040_v1, -inf }
 0xbac   :  { %1045 = vmax.xlane.f32.xlu0 %v1044_v62 }
 0xbb4   :  { %1051 = vmax.xlane.f32.xlu0 %v1050_v2 }
 0xc17   :  { %v1043_v40 = vpop.xlane.xlu0 %1042  ;;  %v1049_v4 = vpop.xlane.xlu1 %1048 }
 0xc18   :  { %v1053_v41 = vsub.f32 %v1037_v51, %v1043_v40  ;;  %v1055_v6 = vsub.f32 %v1039_v49, %v1049_v4 }
 0xc1a   :  { %v1057_v3 = vmul.f32 1.442695, %v1053_v41  ;;  %v1061_v52 = vmul.f32 1.442695, %v1055_v6  ;;  %v1214_v6 = vld [vmem:[%s1851_s3 + $0x47] sm:$0xff] }
 0xc1c   :  { %1435 = vpow2.f32 %v1057_v3 }
 0xc1f   :  { %v1046_v5 = vpop.xlane.xlu0 %1045 }
 0xc20   :  { %v1054_v7 = vsub.f32 %v1038_v60, %v1046_v5 }
 0xc22   :  { %v1059_v8 = vmul.f32 1.442695, %v1054_v7  ;;  %v1436_v9 = vpop.eup %1435  ;;  %v1215_v7 = vld [vmem:[%s1851_s3 + $0x4f] sm:$0xff] }
 0xc23   :  { %v1065_v10 = vsel %vm206_vm4, %v1436_v9, 0.0  ;;  %1229 = vmatpush.msrb.mxu1 %v1215_v7 }
 0xc24   :  { %1437 = vpow2.f32 %v1059_v8  ;;  %1066 = vadd.xlane.f32.xlu2 %v1065_v10  ;;  %v1213_v8 = vld [vmem:[%s1851_s3 + $0x3f] sm:$0xff]  ;;  %v1212_v10 = vld [vmem:[%s1851_s3 + $0x37] sm:$0xff] }
 0xc25   :  { %1439 = vpow2.f32 %v1061_v52  ;;  %1230 = vmatpush.msrb.mxu1 %v1214_v6  ;;  %v1211_v52 = vld [vmem:[%s1851_s3 + $0x2f] sm:$0xff] }
 0xc27   :  { %v1052_v11 = vpop.xlane.xlu0 %1051  ;;  %1231 = vmatpush.msrb.mxu1 %v1213_v8 }
 0xc28   :  { %v1056_v12 = vsub.f32 %v1040_v1, %v1052_v11  ;;  %v1210_v11 = vld [vmem:[%s1851_s3 + $0x27] sm:$0xff] }
 0xc29   :  { %1232 = vmatpush.msrb.mxu1 %v1212_v10 }
 0xc2a   :  { %v1438_v58 = vpop.eup %1437  ;;  %v1063_v14 = vmul.f32 1.442695, %v1056_v12 }
 0xc2b   :  { %v1068_v13 = vsel %vm206_vm4, %v1438_v58, 0.0  ;;  %v1773_v15 = vpop.eup %1439  ;;  %1233 = vmatpush.msrb.mxu1 %v1211_v52 }
 0xc2c   :  { %1069 = vadd.xlane.f32.xlu0 %v1068_v13  ;;  %1441 = vpow2.f32 %v1063_v14  ;;  %v1071_v16 = vsel %vm206_vm4, %v1773_v15, 0.0  ;;  %v1208_v13 = vld [vmem:[%s1851_s3 + $0x17] sm:$0xff]  ;;  %v1383_v14 = vld [vmem:[%s1851_s3 + $0x14] ss:$0 sm:$0xff] }
 0xc2d   :  { %1234 = vmatpush.msrb.mxu1 %v1210_v11 }
 0xc32   :  { %v1777_v17 = vpop.eup %1441 }
 0xc33   :  { %v1074_v18 = vsel %vm206_vm4, %v1777_v17, 0.0 }
 0xc34   :  { %1072 = vadd.xlane.f32.xlu0 %v1071_v16 }
 0xc3c   :  { %1075 = vadd.xlane.f32.xlu0 %v1074_v18 }
 0xc97   :  { %v1067_v19 = vpop.xlane.xlu2 %1066 }
 0xc98   :  { %1443 = vrcp.f32 %v1067_v19  ;;  %v1088_v24 = vand.u32 2147483648, %v1067_v19  ;;  %v1086_v26 = vand.u32 2147483647, %v1067_v19  ;;  %vm1082_vm2 = vweird.f32 %v1067_v19 }
 0xc9a   :  { %v1089_v29 = vor.u32 1.1754944e-38, %v1088_v24  ;;  %vm1087_vm5 = vcmp.eq.f32.partialorder %v1086_v26, 8.507059e+37  ;;  %v1184_v24 = vld [vmem:[%s1851_s3 + $0x15] sm:$0x3]  ;;  %v1244_v26 = vld [vmem:[%s1851_s3 + $0x68] sm:$0xff] }
 0xc9e   :  { %v1444_v20 = vpop.eup %1443 }
 0xc9f   :  { %v1070_v21 = vpop.xlane.xlu0 %1069  ;;  %v1078_v22 = vmul.f32 %v1444_v20, %v1067_v19  ;;  %vm1083_vm15 = vweird.f32 %v1444_v20 }
 0xca0   :  { %1445 = vrcp.f32 %v1070_v21  ;;  %vm1084_vm3 = vmor %vm1082_vm2, %vm1083_vm15  ;;  %v1103_v37 = vand.u32 2147483648, %v1070_v21  ;;  %v1101_v38 = vand.u32 2147483647, %v1070_v21  ;;  %vm1097_vm7 = vweird.f32 %v1070_v21 }
 0xca1   :  { %v1079_v23 = vsub.f32 1.0, %v1078_v22 }
 0xca2   :  { %v1104_v43 = vor.u32 1.1754944e-38, %v1103_v37  ;;  %vm1102_vm9 = vcmp.eq.f32.partialorder %v1101_v38, 8.507059e+37 }
 0xca3   :  { %v1080_v25 = vmul.f32 %v1444_v20, %v1079_v23 }
 0xca5   :  { %v1081_v28 = vadd.f32 %v1444_v20, %v1080_v25  ;;  %v1245_v25 = vld [vmem:[%s1851_s3 + $0x70] sm:$0xff] }
 0xca6   :  { %v1446_v27 = vpop.eup %1445 }
 0xca7   :  { %v1093_v30 = vmul.f32 %v1446_v27, %v1070_v21  ;;  %v1073_v31 = vpop.xlane.xlu0 %1072  ;;  %v1085_v32 = vsel %vm1084_vm3, %v1444_v20, %v1081_v28  ;;  %vm1098_vm6 = vweird.f32 %v1446_v27  ;;  %v1243_v28 = vld [vmem:[%s1851_s3 + $0x60] sm:$0xff] }
 0xca8   :  { %1447 = vrcp.f32 %v1073_v31  ;;  %v1090_v33 = vsel %vm1087_vm5, %v1089_v29, %v1085_v32  ;;  %vm1099_vm8 = vmor %vm1097_vm7, %vm1098_vm6  ;;  %v1118_v49 = vand.u32 2147483648, %v1073_v31  ;;  %v1116_v53 = vand.u32 2147483647, %v1073_v31  ;;  %v1242_v29 = vld [vmem:[%s1851_s3 + $0x58] sm:$0xff]  ;;  %v1384_v32 = vld [vmem:[%s1851_s3 + $0x57] ss:$0 sm:$0xff] }
 0xca9   :  { %v1094_v34 = vsub.f32 1.0, %v1093_v30  ;;  %v1091_v35 = vmul.f32 %v1436_v9, %v1090_v33  ;;  %vm1112_vm11 = vweird.f32 %v1073_v31  ;;  %v1273_v30 = vld [vmem:[%s1851_s3 + $0x81] sm:$0xff] }
 0xcaa   :  { %v1119_v56 = vor.u32 1.1754944e-38, %v1118_v49  ;;  %vm1117_vm13 = vcmp.eq.f32.partialorder %v1116_v53, 8.507059e+37  ;;  %1293 = vmatpush.msra.mxu3 %v1273_v30 }
 0xcab   :  { %v1095_v36 = vmul.f32 %v1446_v27, %v1094_v34  ;;  %1361 = vmatmul.msk.f32.vlgmr.msra.gmra.mxu0 %vm206_vm4, %v1091_v35 }
 0xcad   :  { %v1096_v39 = vadd.f32 %v1446_v27, %v1095_v36  ;;  %v1385_v36 = vld [vmem:[%s1851_s3 + $0x78] ss:$0 sm:$0xff] }
 0xcae   :  { %v1448_v42 = vpop.eup %1447 }
 0xcaf   :  { %v1108_v44 = vmul.f32 %v1448_v42, %v1073_v31  ;;  %v1076_v45 = vpop.xlane.xlu0 %1075  ;;  %v1100_v46 = vsel %vm1099_vm8, %v1446_v27, %v1096_v39  ;;  %vm1113_vm10 = vweird.f32 %v1448_v42  ;;  %v1272_v31 = vld [vmem:[%s1851_s3 + $0x79] sm:$0xff] }
 0xcb0   :  { %1449 = vrcp.f32 %v1076_v45  ;;  %v1105_v48 = vsel %vm1102_vm9, %v1104_v43, %v1100_v46  ;;  %vm1114_vm12 = vmor %vm1112_vm11, %vm1113_vm10  ;;  %v1133_v63 = vand.u32 2147483648, %v1076_v45  ;;  %v1131_v1 = vand.u32 2147483647, %v1076_v45  ;;  %1294 = vmatpush.msra.mxu3 %v1272_v31 }
 0xcb1   :  { %v1109_v47 = vsub.f32 1.0, %v1108_v44  ;;  %v1106_v50 = vmul.f32 %v1438_v58, %v1105_v48  ;;  %vm1127_vm15 = vweird.f32 %v1076_v45  ;;  %v1209_v58 = vld [vmem:[%s1851_s3 + $0x1f] sm:$0xff] }
 0xcb2   :  { %v1134_v40 = vor.u32 1.1754944e-38, %v1133_v63  ;;  %vm1132_vm3 = vcmp.eq.f32.partialorder %v1131_v1, 8.507059e+37  ;;  %1235 = vmatpush.msrb.mxu1 %v1209_v58 }
 0xcb3   :  { %v1110_v51 = vmul.f32 %v1448_v42, %v1109_v47  ;;  %1362 = vmatmul.msk.f32.gmra.mxu0 %vm206_vm4, %v1106_v50 }
 0xcb4   :  { %1236 = vmatpush.msrb.mxu1 %v1208_v13 }
 0xcb5   :  { %v1111_v54 = vadd.f32 %v1448_v42, %v1110_v51 }
 0xcb6   :  { %v1450_v55 = vpop.eup %1449 }
 0xcb7   :  { %v1123_v57 = vmul.f32 %v1450_v55, %v1076_v45  ;;  %v1115_v59 = vsel %vm1114_vm12, %v1448_v42, %v1111_v54  ;;  %vm1128_vm14 = vweird.f32 %v1450_v55  ;;  %v1386_v42 = vld [vmem:[%s1851_s3 + $0x89] ss:$0 sm:$0xff] }
 0xcb8   :  { %v1120_v60 = vsel %vm1117_vm13, %v1119_v56, %v1115_v59  ;;  %vm1129_vm2 = vmor %vm1127_vm15, %vm1128_vm14 }
 0xcb9   :  { %v1124_v61 = vsub.f32 1.0, %v1123_v57  ;;  %v1121_v62 = vmul.f32 %v1773_v15, %v1120_v60 }
 0xcbb   :  { %v1125_v0 = vmul.f32 %v1450_v55, %v1124_v61  ;;  %1363 = vmatmul.msk.f32.gmra.mxu0 %vm206_vm4, %v1121_v62 }
 0xcbd   :  { %v1126_v2 = vadd.f32 %v1450_v55, %v1125_v0 }
 0xcbf   :  { %v1130_v41 = vsel %vm1129_vm2, %v1450_v55, %v1126_v2 }
 0xcc0   :  { %v1135_v3 = vsel %vm1132_vm3, %v1134_v40, %v1130_v41 }
 0xcc1   :  { %v1136_v4 = vmul.f32 %v1777_v17, %v1135_v3 }
 0xcc3   :  { %1364 = vmatmul.msk.f32.gmra.mxu0 %vm206_vm4, %v1136_v4 }
 0xd28   :  { %v1168_v5 = vpop.f32.mrf.mxu0 }
 0xd29   :  { %v1169_v20 = vadd.f32 %v1383_v14, %v1168_v5 }
 0xd2b   :  { %v1180_v23 = vmax.f32 %v1169_v20, 0.0 }
 0xd30   :  { %v1171_v9 = vpop.f32.mrf.mxu0 }
 0xd31   :  { %v1172_v18 = vadd.f32 %v1383_v14, %v1171_v9 }
 0xd33   :  { %v1181_v22 = vmax.f32 %v1172_v18, 0.0 }
 0xd38   :  { %v1174_v12 = vpop.f32.mrf.mxu0 }
 0xd39   :  { %v1175_v16 = vadd.f32 %v1383_v14, %v1174_v12 }
 0xd3b   :  { %v1182_v21 = vmax.f32 %v1175_v16, 0.0 }
 0xd40   :  { %v1177_v15 = vpop.f32.mrf.mxu0 }
 0xd41   :  { %v1178_v17 = vadd.f32 %v1383_v14, %v1177_v15 }
 0xd43   :  { %v1183_v19 = vmax.f32 %v1178_v17, 0.0 }
 0xd45   :  { %1200 = vmatpush.msra.mxu2 %v1183_v19 }
 0xd47   :  { %1201 = vmatpush.msra.mxu2 %v1182_v21 }
 0xd49   :  { %1202 = vmatpush.msra.mxu2 %v1181_v22 }
 0xd4b   :  { %1203 = vmatpush.msra.mxu2 %v1180_v23 }
 0xd4c   :  { %1365 = vmatmul.msk.f32.vlgmr.msra.gmra.mxu2 %vm206_vm4, %v1184_v24 }
 0xd4d   :  { %1263 = vmatpush.msrb.mxu2 %v1245_v25 }
 0xd4f   :  { %1264 = vmatpush.msrb.mxu2 %v1244_v26 }
 0xd51   :  { %1265 = vmatpush.msrb.mxu2 %v1243_v28 }
 0xd53   :  { %1266 = vmatpush.msrb.mxu2 %v1242_v29 }
 0xdcf   :  { %v1205_v27 = vpop.f32.mrf.mxu2 }
 0xdd0   :  { %1366 = vmatmul.msk.f32.vlgmr.msrb.gmra.mxu1 %vm79_vm1, %v1205_v27  ;;  %vm1299_vm1 = vcmask 1024  }
 0xe4d   :  { %v1238_v33 = vpop.f32.mrf.mxu1 }
 0xe4e   :  { %v1239_v34 = vadd.f32 %v1384_v32, %v1238_v33 }
 0xe50   :  { %v1241_v35 = vmax.f32 %v1239_v34, 0.0 }
 0xe52   :  { %1367 = vmatmul.msk.f32.vlgmr.msrb.gmra.mxu2 %vm206_vm4, %v1241_v35 }
 0xed5   :  { %v1268_v37 = vpop.f32.mrf.mxu2 }
 0xed6   :  { %v1269_v38 = vadd.f32 %v1385_v36, %v1268_v37 }
 0xed8   :  { %v1271_v39 = vmax.f32 %v1269_v38, 0.0 }
 0xeda   :  { %1368 = vmatmul.msk.f32.vlgmr.msra.gmra.mxu3 %vm25_vm0, %v1271_v39 }
 0xf5d   :  { %v1296_v43 = vpop.f32.mrf.mxu3 }
 0xf5e   :  { %v1297_v44 = vadd.f32 %v1386_v42, %v1296_v43 }
 0xf60   :  { %1300 = vst.msk [vmem:[%s1855_s4] sm:$0x3] %vm1299_vm1, %v1297_v44 }

</bundles_post_ra>
